<compile_context>
chip_gen: v5e
topology: v5e:2x2
jax: 0.10.0
libtpu: 0.0.40
codegen_flags: <defaults>
</compile_context>

<pallas_src>
import jax
import jax.numpy as jnp
from jax.experimental import pallas as pl
from jax.experimental.pallas import tpu as pltpu


def _leaky_relu(x, alpha=0.1):
    return jnp.where(x > 0, x, alpha * x)


def _tree(vals, op):
    """Pairwise (log-depth) reduction of a short Python list of arrays."""
    vals = list(vals)
    while len(vals) > 1:
        nxt = [op(vals[i], vals[i + 1]) for i in range(0, len(vals) - 1, 2)]
        if len(vals) % 2:
            nxt.append(vals[-1])
        vals = nxt
    return vals[0]


def _vqvae_encoder_kernel(
    x_ref,      # (T*B, D)  acoustic features, time-major flattened, f32
    w11_ref,    # (D, D)    fc11 weight, pre-transposed (y = x @ w11 + b11)
    b11_ref,    # (1, D)
    wihf_ref,   # (D, 8H)   fwd input->gate weights placed in fwd lane slots, 0 elsewhere
    bihf_ref,   # (1, 8H)   fwd (b_ih + b_hh) in fwd slots, 0 elsewhere
    wihb_ref,   # (D, 8H)   bwd input->gate weights in bwd slots, 0 elsewhere
    bihb_ref,   # (1, 8H)   bwd biases in bwd slots
    whh_ref,    # (2H, 8H)  block-structured recurrent weights (rows 0:H = h_f, H:2H = h_b)
    gsc_ref,    # (1, 8H)   activation scale a (sigmoid slots 0.5, tanh slots 1.0)
    gbi_ref,    # (1, 8H)   activation bias  b (sigmoid slots 0.5, tanh slots 0.0)
    wcf_ref,    # (1, H)    calc_weight, forward half
    wcb_ref,    # (1, H)    calc_weight, backward half
    w12f_ref,   # (H, E)    fc12 weight (transposed), forward-half rows
    w12b_ref,   # (H, E)    backward-half rows
    b12_ref,    # (1, E)
    o_ref,      # (B, E)    output
    hsf_ref,    # (T, B, H) VMEM scratch: forward hidden states per time step
    hsb_ref,    # (T, B, H) VMEM scratch: backward hidden states per time step
):
    f32 = jnp.float32
    B, _E = o_ref.shape
    TB = x_ref.shape[0]
    T = TB // B
    H2 = whh_ref.shape[0]        # 2H
    H = H2 // 2

    # ---- Hoisted, batched input-side work (off the serial critical path) ----
    # fc11 + LeakyReLU(0.1) over all T*B rows: one MXU pass.
    x11 = _leaky_relu(
        jnp.dot(x_ref[...], w11_ref[...], preferred_element_type=f32) + b11_ref[...])

    # Input->gate pre-activations for both directions, biases folded in.
    # Gate-axis layout (H lanes per slot): [ i_f i_b | f_f f_b | g_f g_b | o_f o_b ].
    # xg_f has values only in fwd slots, xg_b only in bwd slots, so the per-step
    # combine for (fwd time tf, bwd time tb) is a single full-width add.
    xg_f = jnp.dot(x11, wihf_ref[...], preferred_element_type=f32) + bihf_ref[...]
    xg_b = jnp.dot(x11, wihb_ref[...], preferred_element_type=f32) + bihb_ref[...]

    whh = whh_ref[...]
    gsc = gsc_ref[...]
    gbi = gbi_ref[...]

    # ---- Serial recurrence: forward & backward chains fused in one state ----
    h_cat = jnp.zeros((B, H2), f32)      # [h_f | h_b]
    c_cat = jnp.zeros((B, H2), f32)      # [c_f | c_b]

    for s in range(T):
        tf = s
        tb = T - 1 - s
        # Independent of h -> overlaps the recurrent matmul.
        x_step = xg_f[tf * B:(tf + 1) * B, :] + xg_b[tb * B:(tb + 1) * B, :]
        # ONE block-structured MXU push for both directions and all 4 gates.
        gates = x_step + jnp.dot(h_cat, whh, preferred_element_type=f32)
        # ONE full-width EUP push: lane-wise a*tanh(a*x)+b = sigmoid / tanh per slot.
        act = gsc * jnp.tanh(gsc * gates) + gbi
        i_g = act[:, 0 * H2:1 * H2]      # [i_f | i_b]
        f_g = act[:, 1 * H2:2 * H2]
        g_g = act[:, 2 * H2:3 * H2]
        o_g = act[:, 3 * H2:4 * H2]
        c_cat = f_g * c_cat + i_g * g_g
        h_cat = o_g * jnp.tanh(c_cat)
        # Store per-time hidden states (bounded live state, feeds the pooled tail).
        hsf_ref[tf] = h_cat[:, 0:H]
        hsb_ref[tb] = h_cat[:, H:H2]

    # ---- Attention pooling tail (vectorized over the whole (T, B, H) stacks) ----
    hf = hsf_ref[...]                    # (T, B, H), time-ordered forward outputs
    hb = hsb_ref[...]                    # (T, B, H), time-ordered backward outputs
    # One lane reduction over the full stack instead of 2T per-step reductions.
    logits = jnp.sum(hf * wcf_ref[...] + hb * wcb_ref[...],
                     axis=-1, keepdims=True)                       # (T, B, 1)

    lg = [logits[t] for t in range(T)]                             # (B, 1) each
    m = _tree(lg, jnp.maximum)
    es = [jnp.exp(l - m) for l in lg]
    inv_denom = pl.reciprocal(_tree(es, lambda a, b: a + b), approx=True)
    ws = [e * inv_denom for e in es]
    pooled_f = _tree([ws[t] * hf[t] for t in range(T)], lambda a, b: a + b)   # (B, H)
    pooled_b = _tree([ws[t] * hb[t] for t in range(T)], lambda a, b: a + b)   # (B, H)

    # fc12 applied to `out` (NOT the LeakyReLU'd out2), matching the PyTorch code.
    o_ref[...] = (jnp.dot(pooled_f, w12f_ref[...], preferred_element_type=f32)
                  + jnp.dot(pooled_b, w12b_ref[...], preferred_element_type=f32)
                  + b12_ref[...])


def vqvae_forward(acoustic_features, linguistic_features, kernel_params):
    """acoustic_features: (B, T, D) float32. linguistic_features unused by forward()."""
    del linguistic_features  # unused in the reference forward pass
    x = acoustic_features.astype(jnp.float32)
    B, T, D = x.shape
    # Time-major flatten (tiny host-side op) so every recurrent step reads a
    # contiguous (B, .) row slab and the kernel needs no reshapes/transposes.
    x_flat = jnp.transpose(x, (1, 0, 2)).reshape(T * B, D)

    (w11, b11, wihf, bihf, wihb, bihb, whh, gsc, gbi,
     wcf, wcb, w12f, w12b, b12) = kernel_params
    H = wcf.shape[-1]
    E = b12.shape[-1]
    args = (x_flat, w11, b11, wihf, bihf, wihb, bihb, whh, gsc, gbi,
            wcf, wcb, w12f, w12b, b12)

    vmem_spec = pl.BlockSpec(memory_space=pltpu.MemorySpace.VMEM)
    # Whole problem (a few KB) fits in VMEM on v5e/v6e/v7x -> single program, no grid.
    return pl.pallas_call(
        _vqvae_encoder_kernel,
        out_shape=jax.ShapeDtypeStruct((B, E), jnp.float32),
        in_specs=[vmem_spec] * len(args),
        out_specs=vmem_spec,
        scratch_shapes=[pltpu.VMEM((T, B, H), jnp.float32),
                        pltpu.VMEM((T, B, H), jnp.float32)],
    )(*args)


def init_torch_params(key, D, H, E, num_class):
    """Deterministic synthetic parameters with PyTorch layout/shapes."""
    ks = jax.random.split(key, 16)

    def nrm(k, shape, scale=0.1):
        return scale * jax.random.normal(k, shape, jnp.float32)

    return {
        "W_fc11": nrm(ks[0], (D, D)),   "b_fc11": nrm(ks[1], (D,)),
        "W_ih_f": nrm(ks[2], (4 * H, D)), "W_hh_f": nrm(ks[3], (4 * H, H)),
        "b_ih_f": nrm(ks[4], (4 * H,)),   "b_hh_f": nrm(ks[5], (4 * H,)),
        "W_ih_b": nrm(ks[6], (4 * H, D)), "W_hh_b": nrm(ks[7], (4 * H, H)),
        "b_ih_b": nrm(ks[8], (4 * H,)),   "b_hh_b": nrm(ks[9], (4 * H,)),
        "W_calc": nrm(ks[10], (1, 2 * H)),
        "W_fc12": nrm(ks[11], (E, 2 * H)), "b_fc12": nrm(ks[12], (E,)),
        # quantized_vectors codebook exists in __init__ but is unused by forward()
        "codebook": jax.random.normal(ks[13], (num_class, E), jnp.float32),
    }


def to_kernel_params(tp, H):
    """Pre-transpose / fuse PyTorch weights into the kernel layout (all f32).

    Gate order inside each PyTorch 4H block is i, f, g, o.  The kernel's fused
    8H gate axis uses H-lane slots ordered [ i_f i_b | f_f f_b | g_f g_b | o_f o_b ].
    """
    f32 = jnp.float32
    D = tp["W_fc11"].shape[0]
    H2, H8 = 2 * H, 8 * H

    def rows(W, g):  # gate-g rows of a PyTorch (4H, X) stacked weight
        return W[g * H:(g + 1) * H, :]

    def vec(v, g):
        return v[g * H:(g + 1) * H]

    wih_f = jnp.zeros((D, H8), f32)
    wih_b = jnp.zeros((D, H8), f32)
    bih_f = jnp.zeros((H8,), f32)
    bih_b = jnp.zeros((H8,), f32)
    whh = jnp.zeros((H2, H8), f32)
    for g in range(4):
        fs = slice((2 * g) * H, (2 * g + 1) * H)        # fwd slot of gate g
        bs = slice((2 * g + 1) * H, (2 * g + 2) * H)    # bwd slot of gate g
        wih_f = wih_f.at[:, fs].set(rows(tp["W_ih_f"], g).T)
        wih_b = wih_b.at[:, bs].set(rows(tp["W_ih_b"], g).T)
        bih_f = bih_f.at[fs].set(vec(tp["b_ih_f"], g) + vec(tp["b_hh_f"], g))
        bih_b = bih_b.at[bs].set(vec(tp["b_ih_b"], g) + vec(tp["b_hh_b"], g))
        whh = whh.at[0:H, fs].set(rows(tp["W_hh_f"], g).T)     # h_f -> fwd slots only
        whh = whh.at[H:H2, bs].set(rows(tp["W_hh_b"], g).T)    # h_b -> bwd slots only

    # Lane-wise coefficients for act = a*tanh(a*x)+b on the whole gate vector:
    # sigmoid slots (i, f, o): a = b = 0.5 ; tanh slots (g): a = 1, b = 0.
    sig = 0.5 * jnp.ones((H2,), f32)
    tnh = jnp.ones((H2,), f32)
    gsc = jnp.concatenate([sig, sig, tnh, sig]).reshape(1, -1)                 # (1, 8H)
    gbi = jnp.concatenate([sig, sig, jnp.zeros((H2,), f32), sig]).reshape(1, -1)

    w12T = tp["W_fc12"].T                                   # (2H, E)
    return (
        tp["W_fc11"].T,                   # (D, D)
        tp["b_fc11"].reshape(1, -1),      # (1, D)
        wih_f, bih_f.reshape(1, -1),      # (D, 8H), (1, 8H)
        wih_b, bih_b.reshape(1, -1),      # (D, 8H), (1, 8H)
        whh,                              # (2H, 8H)
        gsc, gbi,                         # (1, 8H) x2
        tp["W_calc"][:, :H],              # (1, H)
        tp["W_calc"][:, H:],              # (1, H)
        w12T[:H], w12T[H:],               # (H, E) x2
        tp["b_fc12"].reshape(1, -1),      # (1, E)
    )


def reference_forward(acoustic_btd, tp, H):
    """Pure-JAX (f32) mirror of the PyTorch encode() semantics (equal-length batch)."""
    x = acoustic_btd.astype(jnp.float32)
    B, T, D = x.shape
    x11 = _leaky_relu(x @ tp["W_fc11"].T + tp["b_fc11"])

    def lstm_dir(Wih, Whh, bih, bhh, reverse):
        h = jnp.zeros((B, H), jnp.float32)
        c = jnp.zeros((B, H), jnp.float32)
        hs = [None] * T
        order = range(T - 1, -1, -1) if reverse else range(T)
        for t in order:
            g = x11[:, t, :] @ Wih.T + h @ Whh.T + bih + bhh
            i = jax.nn.sigmoid(g[:, 0:H])
            f = jax.nn.sigmoid(g[:, H:2 * H])
            gg = jnp.tanh(g[:, 2 * H:3 * H])
            o = jax.nn.sigmoid(g[:, 3 * H:4 * H])
            c = f * c + i * gg
            h = o * jnp.tanh(c)
            hs[t] = h
        return jnp.stack(hs, axis=1)                         # (B, T, H)

    hf = lstm_dir(tp["W_ih_f"], tp["W_hh_f"], tp["b_ih_f"], tp["b_hh_f"], False)
    hb = lstm_dir(tp["W_ih_b"], tp["W_hh_b"], tp["b_ih_b"], tp["b_hh_b"], True)
    out = jnp.concatenate([hf, hb], axis=-1)                 # (B, T, 2H)
    logits = out @ tp["W_calc"].T                            # (B, T, 1)
    w = jax.nn.softmax(logits, axis=1)
    pooled = jnp.sum(w * out, axis=1)                        # (B, 2H)
    return pooled @ tp["W_fc12"].T + tp["b_fc12"]            # (B, E)


if __name__ == "__main__":
    # Small shapes consistent with the module's constructor signature.
    B, T = 2, 8
    acousticDim, linguisticDim = 16, 6
    hiddenDim1, hiddenDim2 = 32, 24
    encoderOutDim, lstm2Dim, acousticOutDim = 8, 20, 10
    num_class = 4

    key = jax.random.PRNGKey(0)
    k_x, k_l, k_p = jax.random.split(key, 3)
    acoustic = jax.random.normal(k_x, (B, T, acousticDim), jnp.float32)
    linguistic = jax.random.normal(k_l, (B, T, linguisticDim), jnp.float32)  # unused by forward

    torch_params = init_torch_params(k_p, acousticDim, hiddenDim1, encoderOutDim, num_class)
    kernel_params = to_kernel_params(torch_params, hiddenDim1)

    out = vqvae_forward(acoustic, linguistic, kernel_params)
    out = jax.block_until_ready(out)

    ref = reference_forward(acoustic, torch_params, hiddenDim1)
    assert out.shape == (B, encoderOutDim), out.shape
    max_err = float(jnp.max(jnp.abs(out - ref)))
    # f32 weights everywhere; remaining deltas are MXU internal precision + approx recip.
    assert max_err < 1e-2, f"mismatch vs pure-JAX reference, max abs err {max_err}"

    print("KERNEL_OK")
</pallas_src>

<mosaic_0001>
module attributes {stable_mosaic.version = 11 : i64} {
  func.func @_vqvae_encoder_kernel(%arg0: memref<16x16xf32, #tpu.memory_space<vmem>>, %arg1: memref<16x16xf32, #tpu.memory_space<vmem>>, %arg2: memref<1x16xf32, #tpu.memory_space<vmem>>, %arg3: memref<16x256xf32, #tpu.memory_space<vmem>>, %arg4: memref<1x256xf32, #tpu.memory_space<vmem>>, %arg5: memref<16x256xf32, #tpu.memory_space<vmem>>, %arg6: memref<1x256xf32, #tpu.memory_space<vmem>>, %arg7: memref<64x256xf32, #tpu.memory_space<vmem>>, %arg8: memref<1x256xf32, #tpu.memory_space<vmem>>, %arg9: memref<1x256xf32, #tpu.memory_space<vmem>>, %arg10: memref<1x32xf32, #tpu.memory_space<vmem>>, %arg11: memref<1x32xf32, #tpu.memory_space<vmem>>, %arg12: memref<32x8xf32, #tpu.memory_space<vmem>>, %arg13: memref<32x8xf32, #tpu.memory_space<vmem>>, %arg14: memref<1x8xf32, #tpu.memory_space<vmem>>, %arg15: memref<2x8xf32, #tpu.memory_space<vmem>>, %arg16: memref<8x2x32xf32, #tpu.memory_space<vmem>>, %arg17: memref<8x2x32xf32, #tpu.memory_space<vmem>>) attributes {dimension_semantics = [], scalar_prefetch = 0 : i64, scratch_operands = 2 : i64, tpu.core_type = #tpu.core_type<tc>} {
    %c0 = arith.constant 0 : index
    %c0_0 = arith.constant 0 : index
    %0 = vector.load %arg0[%c0, %c0_0] : memref<16x16xf32, #tpu.memory_space<vmem>>, vector<16x16xf32>
    %c0_1 = arith.constant 0 : index
    %c0_2 = arith.constant 0 : index
    %1 = vector.load %arg1[%c0_1, %c0_2] : memref<16x16xf32, #tpu.memory_space<vmem>>, vector<16x16xf32>
    %cst = arith.constant dense<0.000000e+00> : vector<16x16xf32>
    %2 = tpu.matmul %0, %1, %cst {dimension_numbers = #tpu.dot_dimension_numbers<[1], [0], [0], [1], [0, 0, 1, 1], [], []>} : vector<16x16xf32>, vector<16x16xf32>, vector<16x16xf32> -> vector<16x16xf32>
    %c0_3 = arith.constant 0 : index
    %c0_4 = arith.constant 0 : index
    %3 = vector.load %arg2[%c0_3, %c0_4] : memref<1x16xf32, #tpu.memory_space<vmem>>, vector<1x16xf32>
    %4 = vector.broadcast %3 : vector<1x16xf32> to vector<16x16xf32>
    %5 = arith.addf %2, %4 : vector<16x16xf32>
    %cst_5 = arith.constant 0.000000e+00 : f32
    %6 = vector.broadcast %cst_5 : f32 to vector<16x16xf32>
    %7 = arith.cmpf ogt, %5, %6 : vector<16x16xf32>
    %cst_6 = arith.constant 1.000000e-01 : f32
    %8 = vector.broadcast %cst_6 : f32 to vector<16x16xf32>
    %9 = arith.mulf %8, %5 : vector<16x16xf32>
    %10 = arith.select %7, %5, %9 : vector<16x16xi1>, vector<16x16xf32>
    %c0_7 = arith.constant 0 : index
    %c0_8 = arith.constant 0 : index
    %11 = vector.load %arg3[%c0_7, %c0_8] : memref<16x256xf32, #tpu.memory_space<vmem>>, vector<16x256xf32>
    %cst_9 = arith.constant dense<0.000000e+00> : vector<16x256xf32>
    %12 = tpu.matmul %10, %11, %cst_9 {dimension_numbers = #tpu.dot_dimension_numbers<[1], [0], [0], [1], [0, 0, 1, 1], [], []>} : vector<16x16xf32>, vector<16x256xf32>, vector<16x256xf32> -> vector<16x256xf32>
    %c0_10 = arith.constant 0 : index
    %c0_11 = arith.constant 0 : index
    %13 = vector.load %arg4[%c0_10, %c0_11] : memref<1x256xf32, #tpu.memory_space<vmem>>, vector<1x256xf32>
    %14 = vector.broadcast %13 : vector<1x256xf32> to vector<16x256xf32>
    %15 = arith.addf %12, %14 : vector<16x256xf32>
    %c0_12 = arith.constant 0 : index
    %c0_13 = arith.constant 0 : index
    %16 = vector.load %arg5[%c0_12, %c0_13] : memref<16x256xf32, #tpu.memory_space<vmem>>, vector<16x256xf32>
    %cst_14 = arith.constant dense<0.000000e+00> : vector<16x256xf32>
    %17 = tpu.matmul %10, %16, %cst_14 {dimension_numbers = #tpu.dot_dimension_numbers<[1], [0], [0], [1], [0, 0, 1, 1], [], []>} : vector<16x16xf32>, vector<16x256xf32>, vector<16x256xf32> -> vector<16x256xf32>
    %c0_15 = arith.constant 0 : index
    %c0_16 = arith.constant 0 : index
    %18 = vector.load %arg6[%c0_15, %c0_16] : memref<1x256xf32, #tpu.memory_space<vmem>>, vector<1x256xf32>
    %19 = vector.broadcast %18 : vector<1x256xf32> to vector<16x256xf32>
    %20 = arith.addf %17, %19 : vector<16x256xf32>
    %c0_17 = arith.constant 0 : index
    %c0_18 = arith.constant 0 : index
    %21 = vector.load %arg7[%c0_17, %c0_18] : memref<64x256xf32, #tpu.memory_space<vmem>>, vector<64x256xf32>
    %c0_19 = arith.constant 0 : index
    %c0_20 = arith.constant 0 : index
    %22 = vector.load %arg8[%c0_19, %c0_20] : memref<1x256xf32, #tpu.memory_space<vmem>>, vector<1x256xf32>
    %c0_21 = arith.constant 0 : index
    %c0_22 = arith.constant 0 : index
    %23 = vector.load %arg9[%c0_21, %c0_22] : memref<1x256xf32, #tpu.memory_space<vmem>>, vector<1x256xf32>
    %cst_23 = arith.constant 0.000000e+00 : f32
    %24 = vector.broadcast %cst_23 : f32 to vector<2x64xf32>
    %cst_24 = arith.constant 0.000000e+00 : f32
    %25 = vector.broadcast %cst_24 : f32 to vector<2x64xf32>
    %26 = vector.extract_strided_slice %15 {offsets = [0, 0], sizes = [2, 256], strides = [1, 1]} : vector<16x256xf32> to vector<2x256xf32>
    %27 = vector.extract_strided_slice %20 {offsets = [14, 0], sizes = [2, 256], strides = [1, 1]} : vector<16x256xf32> to vector<2x256xf32>
    %28 = arith.addf %26, %27 : vector<2x256xf32>
    %cst_25 = arith.constant dense<0.000000e+00> : vector<2x256xf32>
    %29 = tpu.matmul %24, %21, %cst_25 {dimension_numbers = #tpu.dot_dimension_numbers<[1], [0], [0], [1], [0, 0, 1, 1], [], []>} : vector<2x64xf32>, vector<64x256xf32>, vector<2x256xf32> -> vector<2x256xf32>
    %30 = arith.addf %28, %29 : vector<2x256xf32>
    %31 = vector.broadcast %22 : vector<1x256xf32> to vector<2x256xf32>
    %32 = arith.mulf %31, %30 : vector<2x256xf32>
    %33 = math.tanh %32 : vector<2x256xf32>
    %34 = vector.broadcast %22 : vector<1x256xf32> to vector<2x256xf32>
    %35 = arith.mulf %34, %33 : vector<2x256xf32>
    %36 = vector.broadcast %23 : vector<1x256xf32> to vector<2x256xf32>
    %37 = arith.addf %35, %36 : vector<2x256xf32>
    %38 = vector.extract_strided_slice %37 {offsets = [0, 0], sizes = [2, 64], strides = [1, 1]} : vector<2x256xf32> to vector<2x64xf32>
    %39 = vector.extract_strided_slice %37 {offsets = [0, 64], sizes = [2, 64], strides = [1, 1]} : vector<2x256xf32> to vector<2x64xf32>
    %40 = vector.extract_strided_slice %37 {offsets = [0, 128], sizes = [2, 64], strides = [1, 1]} : vector<2x256xf32> to vector<2x64xf32>
    %41 = vector.extract_strided_slice %37 {offsets = [0, 192], sizes = [2, 64], strides = [1, 1]} : vector<2x256xf32> to vector<2x64xf32>
    %42 = arith.mulf %39, %25 : vector<2x64xf32>
    %43 = arith.mulf %38, %40 : vector<2x64xf32>
    %44 = arith.addf %42, %43 : vector<2x64xf32>
    %45 = math.tanh %44 : vector<2x64xf32>
    %46 = arith.mulf %41, %45 : vector<2x64xf32>
    %47 = vector.extract_strided_slice %46 {offsets = [0, 0], sizes = [2, 32], strides = [1, 1]} : vector<2x64xf32> to vector<2x32xf32>
    %c0_26 = arith.constant 0 : index
    %c0_27 = arith.constant 0 : index
    %c0_28 = arith.constant 0 : index
    %48 = vector.load %arg16[%c0_26, %c0_27, %c0_28] : memref<8x2x32xf32, #tpu.memory_space<vmem>>, vector<1x2x32xf32>
    %49 = vector.shape_cast %48 : vector<1x2x32xf32> to vector<2x32xf32>
    %50 = vector.shape_cast %47 : vector<2x32xf32> to vector<1x2x32xf32>
    tpu.vector_store %arg16[%c0_26, %c0_27, %c0_28], %50 {strides = array<i32>} : memref<8x2x32xf32, #tpu.memory_space<vmem>>, vector<1x2x32xf32>,
    %51 = vector.extract_strided_slice %46 {offsets = [0, 32], sizes = [2, 32], strides = [1, 1]} : vector<2x64xf32> to vector<2x32xf32>
    %c7 = arith.constant 7 : index
    %c0_29 = arith.constant 0 : index
    %c0_30 = arith.constant 0 : index
    %52 = vector.load %arg17[%c7, %c0_29, %c0_30] : memref<8x2x32xf32, #tpu.memory_space<vmem>>, vector<1x2x32xf32>
    %53 = vector.shape_cast %52 : vector<1x2x32xf32> to vector<2x32xf32>
    %54 = vector.shape_cast %51 : vector<2x32xf32> to vector<1x2x32xf32>
    tpu.vector_store %arg17[%c7, %c0_29, %c0_30], %54 {strides = array<i32>} : memref<8x2x32xf32, #tpu.memory_space<vmem>>, vector<1x2x32xf32>,
    %55 = vector.extract_strided_slice %15 {offsets = [2, 0], sizes = [2, 256], strides = [1, 1]} : vector<16x256xf32> to vector<2x256xf32>
    %56 = vector.extract_strided_slice %20 {offsets = [12, 0], sizes = [2, 256], strides = [1, 1]} : vector<16x256xf32> to vector<2x256xf32>
    %57 = arith.addf %55, %56 : vector<2x256xf32>
    %cst_31 = arith.constant dense<0.000000e+00> : vector<2x256xf32>
    %58 = tpu.matmul %46, %21, %cst_31 {dimension_numbers = #tpu.dot_dimension_numbers<[1], [0], [0], [1], [0, 0, 1, 1], [], []>} : vector<2x64xf32>, vector<64x256xf32>, vector<2x256xf32> -> vector<2x256xf32>
    %59 = arith.addf %57, %58 : vector<2x256xf32>
    %60 = vector.broadcast %22 : vector<1x256xf32> to vector<2x256xf32>
    %61 = arith.mulf %60, %59 : vector<2x256xf32>
    %62 = math.tanh %61 : vector<2x256xf32>
    %63 = vector.broadcast %22 : vector<1x256xf32> to vector<2x256xf32>
    %64 = arith.mulf %63, %62 : vector<2x256xf32>
    %65 = vector.broadcast %23 : vector<1x256xf32> to vector<2x256xf32>
    %66 = arith.addf %64, %65 : vector<2x256xf32>
    %67 = vector.extract_strided_slice %66 {offsets = [0, 0], sizes = [2, 64], strides = [1, 1]} : vector<2x256xf32> to vector<2x64xf32>
    %68 = vector.extract_strided_slice %66 {offsets = [0, 64], sizes = [2, 64], strides = [1, 1]} : vector<2x256xf32> to vector<2x64xf32>
    %69 = vector.extract_strided_slice %66 {offsets = [0, 128], sizes = [2, 64], strides = [1, 1]} : vector<2x256xf32> to vector<2x64xf32>
    %70 = vector.extract_strided_slice %66 {offsets = [0, 192], sizes = [2, 64], strides = [1, 1]} : vector<2x256xf32> to vector<2x64xf32>
    %71 = arith.mulf %68, %44 : vector<2x64xf32>
    %72 = arith.mulf %67, %69 : vector<2x64xf32>
    %73 = arith.addf %71, %72 : vector<2x64xf32>
    %74 = math.tanh %73 : vector<2x64xf32>
    %75 = arith.mulf %70, %74 : vector<2x64xf32>
    %76 = vector.extract_strided_slice %75 {offsets = [0, 0], sizes = [2, 32], strides = [1, 1]} : vector<2x64xf32> to vector<2x32xf32>
    %c1 = arith.constant 1 : index
    %c0_32 = arith.constant 0 : index
    %c0_33 = arith.constant 0 : index
    %77 = vector.load %arg16[%c1, %c0_32, %c0_33] : memref<8x2x32xf32, #tpu.memory_space<vmem>>, vector<1x2x32xf32>
    %78 = vector.shape_cast %77 : vector<1x2x32xf32> to vector<2x32xf32>
    %79 = vector.shape_cast %76 : vector<2x32xf32> to vector<1x2x32xf32>
    tpu.vector_store %arg16[%c1, %c0_32, %c0_33], %79 {strides = array<i32>} : memref<8x2x32xf32, #tpu.memory_space<vmem>>, vector<1x2x32xf32>,
    %80 = vector.extract_strided_slice %75 {offsets = [0, 32], sizes = [2, 32], strides = [1, 1]} : vector<2x64xf32> to vector<2x32xf32>
    %c6 = arith.constant 6 : index
    %c0_34 = arith.constant 0 : index
    %c0_35 = arith.constant 0 : index
    %81 = vector.load %arg17[%c6, %c0_34, %c0_35] : memref<8x2x32xf32, #tpu.memory_space<vmem>>, vector<1x2x32xf32>
    %82 = vector.shape_cast %81 : vector<1x2x32xf32> to vector<2x32xf32>
    %83 = vector.shape_cast %80 : vector<2x32xf32> to vector<1x2x32xf32>
    tpu.vector_store %arg17[%c6, %c0_34, %c0_35], %83 {strides = array<i32>} : memref<8x2x32xf32, #tpu.memory_space<vmem>>, vector<1x2x32xf32>,
    %84 = vector.extract_strided_slice %15 {offsets = [4, 0], sizes = [2, 256], strides = [1, 1]} : vector<16x256xf32> to vector<2x256xf32>
    %85 = vector.extract_strided_slice %20 {offsets = [10, 0], sizes = [2, 256], strides = [1, 1]} : vector<16x256xf32> to vector<2x256xf32>
    %86 = arith.addf %84, %85 : vector<2x256xf32>
    %cst_36 = arith.constant dense<0.000000e+00> : vector<2x256xf32>
    %87 = tpu.matmul %75, %21, %cst_36 {dimension_numbers = #tpu.dot_dimension_numbers<[1], [0], [0], [1], [0, 0, 1, 1], [], []>} : vector<2x64xf32>, vector<64x256xf32>, vector<2x256xf32> -> vector<2x256xf32>
    %88 = arith.addf %86, %87 : vector<2x256xf32>
    %89 = vector.broadcast %22 : vector<1x256xf32> to vector<2x256xf32>
    %90 = arith.mulf %89, %88 : vector<2x256xf32>
    %91 = math.tanh %90 : vector<2x256xf32>
    %92 = vector.broadcast %22 : vector<1x256xf32> to vector<2x256xf32>
    %93 = arith.mulf %92, %91 : vector<2x256xf32>
    %94 = vector.broadcast %23 : vector<1x256xf32> to vector<2x256xf32>
    %95 = arith.addf %93, %94 : vector<2x256xf32>
    %96 = vector.extract_strided_slice %95 {offsets = [0, 0], sizes = [2, 64], strides = [1, 1]} : vector<2x256xf32> to vector<2x64xf32>
    %97 = vector.extract_strided_slice %95 {offsets = [0, 64], sizes = [2, 64], strides = [1, 1]} : vector<2x256xf32> to vector<2x64xf32>
    %98 = vector.extract_strided_slice %95 {offsets = [0, 128], sizes = [2, 64], strides = [1, 1]} : vector<2x256xf32> to vector<2x64xf32>
    %99 = vector.extract_strided_slice %95 {offsets = [0, 192], sizes = [2, 64], strides = [1, 1]} : vector<2x256xf32> to vector<2x64xf32>
    %100 = arith.mulf %97, %73 : vector<2x64xf32>
    %101 = arith.mulf %96, %98 : vector<2x64xf32>
    %102 = arith.addf %100, %101 : vector<2x64xf32>
    %103 = math.tanh %102 : vector<2x64xf32>
    %104 = arith.mulf %99, %103 : vector<2x64xf32>
    %105 = vector.extract_strided_slice %104 {offsets = [0, 0], sizes = [2, 32], strides = [1, 1]} : vector<2x64xf32> to vector<2x32xf32>
    %c2 = arith.constant 2 : index
    %c0_37 = arith.constant 0 : index
    %c0_38 = arith.constant 0 : index
    %106 = vector.load %arg16[%c2, %c0_37, %c0_38] : memref<8x2x32xf32, #tpu.memory_space<vmem>>, vector<1x2x32xf32>
    %107 = vector.shape_cast %106 : vector<1x2x32xf32> to vector<2x32xf32>
    %108 = vector.shape_cast %105 : vector<2x32xf32> to vector<1x2x32xf32>
    tpu.vector_store %arg16[%c2, %c0_37, %c0_38], %108 {strides = array<i32>} : memref<8x2x32xf32, #tpu.memory_space<vmem>>, vector<1x2x32xf32>,
    %109 = vector.extract_strided_slice %104 {offsets = [0, 32], sizes = [2, 32], strides = [1, 1]} : vector<2x64xf32> to vector<2x32xf32>
    %c5 = arith.constant 5 : index
    %c0_39 = arith.constant 0 : index
    %c0_40 = arith.constant 0 : index
    %110 = vector.load %arg17[%c5, %c0_39, %c0_40] : memref<8x2x32xf32, #tpu.memory_space<vmem>>, vector<1x2x32xf32>
    %111 = vector.shape_cast %110 : vector<1x2x32xf32> to vector<2x32xf32>
    %112 = vector.shape_cast %109 : vector<2x32xf32> to vector<1x2x32xf32>
    tpu.vector_store %arg17[%c5, %c0_39, %c0_40], %112 {strides = array<i32>} : memref<8x2x32xf32, #tpu.memory_space<vmem>>, vector<1x2x32xf32>,
    %113 = vector.extract_strided_slice %15 {offsets = [6, 0], sizes = [2, 256], strides = [1, 1]} : vector<16x256xf32> to vector<2x256xf32>
    %114 = vector.extract_strided_slice %20 {offsets = [8, 0], sizes = [2, 256], strides = [1, 1]} : vector<16x256xf32> to vector<2x256xf32>
    %115 = arith.addf %113, %114 : vector<2x256xf32>
    %cst_41 = arith.constant dense<0.000000e+00> : vector<2x256xf32>
    %116 = tpu.matmul %104, %21, %cst_41 {dimension_numbers = #tpu.dot_dimension_numbers<[1], [0], [0], [1], [0, 0, 1, 1], [], []>} : vector<2x64xf32>, vector<64x256xf32>, vector<2x256xf32> -> vector<2x256xf32>
    %117 = arith.addf %115, %116 : vector<2x256xf32>
    %118 = vector.broadcast %22 : vector<1x256xf32> to vector<2x256xf32>
    %119 = arith.mulf %118, %117 : vector<2x256xf32>
    %120 = math.tanh %119 : vector<2x256xf32>
    %121 = vector.broadcast %22 : vector<1x256xf32> to vector<2x256xf32>
    %122 = arith.mulf %121, %120 : vector<2x256xf32>
    %123 = vector.broadcast %23 : vector<1x256xf32> to vector<2x256xf32>
    %124 = arith.addf %122, %123 : vector<2x256xf32>
    %125 = vector.extract_strided_slice %124 {offsets = [0, 0], sizes = [2, 64], strides = [1, 1]} : vector<2x256xf32> to vector<2x64xf32>
    %126 = vector.extract_strided_slice %124 {offsets = [0, 64], sizes = [2, 64], strides = [1, 1]} : vector<2x256xf32> to vector<2x64xf32>
    %127 = vector.extract_strided_slice %124 {offsets = [0, 128], sizes = [2, 64], strides = [1, 1]} : vector<2x256xf32> to vector<2x64xf32>
    %128 = vector.extract_strided_slice %124 {offsets = [0, 192], sizes = [2, 64], strides = [1, 1]} : vector<2x256xf32> to vector<2x64xf32>
    %129 = arith.mulf %126, %102 : vector<2x64xf32>
    %130 = arith.mulf %125, %127 : vector<2x64xf32>
    %131 = arith.addf %129, %130 : vector<2x64xf32>
    %132 = math.tanh %131 : vector<2x64xf32>
    %133 = arith.mulf %128, %132 : vector<2x64xf32>
    %134 = vector.extract_strided_slice %133 {offsets = [0, 0], sizes = [2, 32], strides = [1, 1]} : vector<2x64xf32> to vector<2x32xf32>
    %c3 = arith.constant 3 : index
    %c0_42 = arith.constant 0 : index
    %c0_43 = arith.constant 0 : index
    %135 = vector.load %arg16[%c3, %c0_42, %c0_43] : memref<8x2x32xf32, #tpu.memory_space<vmem>>, vector<1x2x32xf32>
    %136 = vector.shape_cast %135 : vector<1x2x32xf32> to vector<2x32xf32>
    %137 = vector.shape_cast %134 : vector<2x32xf32> to vector<1x2x32xf32>
    tpu.vector_store %arg16[%c3, %c0_42, %c0_43], %137 {strides = array<i32>} : memref<8x2x32xf32, #tpu.memory_space<vmem>>, vector<1x2x32xf32>,
    %138 = vector.extract_strided_slice %133 {offsets = [0, 32], sizes = [2, 32], strides = [1, 1]} : vector<2x64xf32> to vector<2x32xf32>
    %c4 = arith.constant 4 : index
    %c0_44 = arith.constant 0 : index
    %c0_45 = arith.constant 0 : index
    %139 = vector.load %arg17[%c4, %c0_44, %c0_45] : memref<8x2x32xf32, #tpu.memory_space<vmem>>, vector<1x2x32xf32>
    %140 = vector.shape_cast %139 : vector<1x2x32xf32> to vector<2x32xf32>
    %141 = vector.shape_cast %138 : vector<2x32xf32> to vector<1x2x32xf32>
    tpu.vector_store %arg17[%c4, %c0_44, %c0_45], %141 {strides = array<i32>} : memref<8x2x32xf32, #tpu.memory_space<vmem>>, vector<1x2x32xf32>,
    %142 = vector.extract_strided_slice %15 {offsets = [8, 0], sizes = [2, 256], strides = [1, 1]} : vector<16x256xf32> to vector<2x256xf32>
    %143 = vector.extract_strided_slice %20 {offsets = [6, 0], sizes = [2, 256], strides = [1, 1]} : vector<16x256xf32> to vector<2x256xf32>
    %144 = arith.addf %142, %143 : vector<2x256xf32>
    %cst_46 = arith.constant dense<0.000000e+00> : vector<2x256xf32>
    %145 = tpu.matmul %133, %21, %cst_46 {dimension_numbers = #tpu.dot_dimension_numbers<[1], [0], [0], [1], [0, 0, 1, 1], [], []>} : vector<2x64xf32>, vector<64x256xf32>, vector<2x256xf32> -> vector<2x256xf32>
    %146 = arith.addf %144, %145 : vector<2x256xf32>
    %147 = vector.broadcast %22 : vector<1x256xf32> to vector<2x256xf32>
    %148 = arith.mulf %147, %146 : vector<2x256xf32>
    %149 = math.tanh %148 : vector<2x256xf32>
    %150 = vector.broadcast %22 : vector<1x256xf32> to vector<2x256xf32>
    %151 = arith.mulf %150, %149 : vector<2x256xf32>
    %152 = vector.broadcast %23 : vector<1x256xf32> to vector<2x256xf32>
    %153 = arith.addf %151, %152 : vector<2x256xf32>
    %154 = vector.extract_strided_slice %153 {offsets = [0, 0], sizes = [2, 64], strides = [1, 1]} : vector<2x256xf32> to vector<2x64xf32>
    %155 = vector.extract_strided_slice %153 {offsets = [0, 64], sizes = [2, 64], strides = [1, 1]} : vector<2x256xf32> to vector<2x64xf32>
    %156 = vector.extract_strided_slice %153 {offsets = [0, 128], sizes = [2, 64], strides = [1, 1]} : vector<2x256xf32> to vector<2x64xf32>
    %157 = vector.extract_strided_slice %153 {offsets = [0, 192], sizes = [2, 64], strides = [1, 1]} : vector<2x256xf32> to vector<2x64xf32>
    %158 = arith.mulf %155, %131 : vector<2x64xf32>
    %159 = arith.mulf %154, %156 : vector<2x64xf32>
    %160 = arith.addf %158, %159 : vector<2x64xf32>
    %161 = math.tanh %160 : vector<2x64xf32>
    %162 = arith.mulf %157, %161 : vector<2x64xf32>
    %163 = vector.extract_strided_slice %162 {offsets = [0, 0], sizes = [2, 32], strides = [1, 1]} : vector<2x64xf32> to vector<2x32xf32>
    %c4_47 = arith.constant 4 : index
    %c0_48 = arith.constant 0 : index
    %c0_49 = arith.constant 0 : index
    %164 = vector.load %arg16[%c4_47, %c0_48, %c0_49] : memref<8x2x32xf32, #tpu.memory_space<vmem>>, vector<1x2x32xf32>
    %165 = vector.shape_cast %164 : vector<1x2x32xf32> to vector<2x32xf32>
    %166 = vector.shape_cast %163 : vector<2x32xf32> to vector<1x2x32xf32>
    tpu.vector_store %arg16[%c4_47, %c0_48, %c0_49], %166 {strides = array<i32>} : memref<8x2x32xf32, #tpu.memory_space<vmem>>, vector<1x2x32xf32>,
    %167 = vector.extract_strided_slice %162 {offsets = [0, 32], sizes = [2, 32], strides = [1, 1]} : vector<2x64xf32> to vector<2x32xf32>
    %c3_50 = arith.constant 3 : index
    %c0_51 = arith.constant 0 : index
    %c0_52 = arith.constant 0 : index
    %168 = vector.load %arg17[%c3_50, %c0_51, %c0_52] : memref<8x2x32xf32, #tpu.memory_space<vmem>>, vector<1x2x32xf32>
    %169 = vector.shape_cast %168 : vector<1x2x32xf32> to vector<2x32xf32>
    %170 = vector.shape_cast %167 : vector<2x32xf32> to vector<1x2x32xf32>
    tpu.vector_store %arg17[%c3_50, %c0_51, %c0_52], %170 {strides = array<i32>} : memref<8x2x32xf32, #tpu.memory_space<vmem>>, vector<1x2x32xf32>,
    %171 = vector.extract_strided_slice %15 {offsets = [10, 0], sizes = [2, 256], strides = [1, 1]} : vector<16x256xf32> to vector<2x256xf32>
    %172 = vector.extract_strided_slice %20 {offsets = [4, 0], sizes = [2, 256], strides = [1, 1]} : vector<16x256xf32> to vector<2x256xf32>
    %173 = arith.addf %171, %172 : vector<2x256xf32>
    %cst_53 = arith.constant dense<0.000000e+00> : vector<2x256xf32>
    %174 = tpu.matmul %162, %21, %cst_53 {dimension_numbers = #tpu.dot_dimension_numbers<[1], [0], [0], [1], [0, 0, 1, 1], [], []>} : vector<2x64xf32>, vector<64x256xf32>, vector<2x256xf32> -> vector<2x256xf32>
    %175 = arith.addf %173, %174 : vector<2x256xf32>
    %176 = vector.broadcast %22 : vector<1x256xf32> to vector<2x256xf32>
    %177 = arith.mulf %176, %175 : vector<2x256xf32>
    %178 = math.tanh %177 : vector<2x256xf32>
    %179 = vector.broadcast %22 : vector<1x256xf32> to vector<2x256xf32>
    %180 = arith.mulf %179, %178 : vector<2x256xf32>
    %181 = vector.broadcast %23 : vector<1x256xf32> to vector<2x256xf32>
    %182 = arith.addf %180, %181 : vector<2x256xf32>
    %183 = vector.extract_strided_slice %182 {offsets = [0, 0], sizes = [2, 64], strides = [1, 1]} : vector<2x256xf32> to vector<2x64xf32>
    %184 = vector.extract_strided_slice %182 {offsets = [0, 64], sizes = [2, 64], strides = [1, 1]} : vector<2x256xf32> to vector<2x64xf32>
    %185 = vector.extract_strided_slice %182 {offsets = [0, 128], sizes = [2, 64], strides = [1, 1]} : vector<2x256xf32> to vector<2x64xf32>
    %186 = vector.extract_strided_slice %182 {offsets = [0, 192], sizes = [2, 64], strides = [1, 1]} : vector<2x256xf32> to vector<2x64xf32>
    %187 = arith.mulf %184, %160 : vector<2x64xf32>
    %188 = arith.mulf %183, %185 : vector<2x64xf32>
    %189 = arith.addf %187, %188 : vector<2x64xf32>
    %190 = math.tanh %189 : vector<2x64xf32>
    %191 = arith.mulf %186, %190 : vector<2x64xf32>
    %192 = vector.extract_strided_slice %191 {offsets = [0, 0], sizes = [2, 32], strides = [1, 1]} : vector<2x64xf32> to vector<2x32xf32>
    %c5_54 = arith.constant 5 : index
    %c0_55 = arith.constant 0 : index
    %c0_56 = arith.constant 0 : index
    %193 = vector.load %arg16[%c5_54, %c0_55, %c0_56] : memref<8x2x32xf32, #tpu.memory_space<vmem>>, vector<1x2x32xf32>
    %194 = vector.shape_cast %193 : vector<1x2x32xf32> to vector<2x32xf32>
    %195 = vector.shape_cast %192 : vector<2x32xf32> to vector<1x2x32xf32>
    tpu.vector_store %arg16[%c5_54, %c0_55, %c0_56], %195 {strides = array<i32>} : memref<8x2x32xf32, #tpu.memory_space<vmem>>, vector<1x2x32xf32>,
    %196 = vector.extract_strided_slice %191 {offsets = [0, 32], sizes = [2, 32], strides = [1, 1]} : vector<2x64xf32> to vector<2x32xf32>
    %c2_57 = arith.constant 2 : index
    %c0_58 = arith.constant 0 : index
    %c0_59 = arith.constant 0 : index
    %197 = vector.load %arg17[%c2_57, %c0_58, %c0_59] : memref<8x2x32xf32, #tpu.memory_space<vmem>>, vector<1x2x32xf32>
    %198 = vector.shape_cast %197 : vector<1x2x32xf32> to vector<2x32xf32>
    %199 = vector.shape_cast %196 : vector<2x32xf32> to vector<1x2x32xf32>
    tpu.vector_store %arg17[%c2_57, %c0_58, %c0_59], %199 {strides = array<i32>} : memref<8x2x32xf32, #tpu.memory_space<vmem>>, vector<1x2x32xf32>,
    %200 = vector.extract_strided_slice %15 {offsets = [12, 0], sizes = [2, 256], strides = [1, 1]} : vector<16x256xf32> to vector<2x256xf32>
    %201 = vector.extract_strided_slice %20 {offsets = [2, 0], sizes = [2, 256], strides = [1, 1]} : vector<16x256xf32> to vector<2x256xf32>
    %202 = arith.addf %200, %201 : vector<2x256xf32>
    %cst_60 = arith.constant dense<0.000000e+00> : vector<2x256xf32>
    %203 = tpu.matmul %191, %21, %cst_60 {dimension_numbers = #tpu.dot_dimension_numbers<[1], [0], [0], [1], [0, 0, 1, 1], [], []>} : vector<2x64xf32>, vector<64x256xf32>, vector<2x256xf32> -> vector<2x256xf32>
    %204 = arith.addf %202, %203 : vector<2x256xf32>
    %205 = vector.broadcast %22 : vector<1x256xf32> to vector<2x256xf32>
    %206 = arith.mulf %205, %204 : vector<2x256xf32>
    %207 = math.tanh %206 : vector<2x256xf32>
    %208 = vector.broadcast %22 : vector<1x256xf32> to vector<2x256xf32>
    %209 = arith.mulf %208, %207 : vector<2x256xf32>
    %210 = vector.broadcast %23 : vector<1x256xf32> to vector<2x256xf32>
    %211 = arith.addf %209, %210 : vector<2x256xf32>
    %212 = vector.extract_strided_slice %211 {offsets = [0, 0], sizes = [2, 64], strides = [1, 1]} : vector<2x256xf32> to vector<2x64xf32>
    %213 = vector.extract_strided_slice %211 {offsets = [0, 64], sizes = [2, 64], strides = [1, 1]} : vector<2x256xf32> to vector<2x64xf32>
    %214 = vector.extract_strided_slice %211 {offsets = [0, 128], sizes = [2, 64], strides = [1, 1]} : vector<2x256xf32> to vector<2x64xf32>
    %215 = vector.extract_strided_slice %211 {offsets = [0, 192], sizes = [2, 64], strides = [1, 1]} : vector<2x256xf32> to vector<2x64xf32>
    %216 = arith.mulf %213, %189 : vector<2x64xf32>
    %217 = arith.mulf %212, %214 : vector<2x64xf32>
    %218 = arith.addf %216, %217 : vector<2x64xf32>
    %219 = math.tanh %218 : vector<2x64xf32>
    %220 = arith.mulf %215, %219 : vector<2x64xf32>
    %221 = vector.extract_strided_slice %220 {offsets = [0, 0], sizes = [2, 32], strides = [1, 1]} : vector<2x64xf32> to vector<2x32xf32>
    %c6_61 = arith.constant 6 : index
    %c0_62 = arith.constant 0 : index
    %c0_63 = arith.constant 0 : index
    %222 = vector.load %arg16[%c6_61, %c0_62, %c0_63] : memref<8x2x32xf32, #tpu.memory_space<vmem>>, vector<1x2x32xf32>
    %223 = vector.shape_cast %222 : vector<1x2x32xf32> to vector<2x32xf32>
    %224 = vector.shape_cast %221 : vector<2x32xf32> to vector<1x2x32xf32>
    tpu.vector_store %arg16[%c6_61, %c0_62, %c0_63], %224 {strides = array<i32>} : memref<8x2x32xf32, #tpu.memory_space<vmem>>, vector<1x2x32xf32>,
    %225 = vector.extract_strided_slice %220 {offsets = [0, 32], sizes = [2, 32], strides = [1, 1]} : vector<2x64xf32> to vector<2x32xf32>
    %c1_64 = arith.constant 1 : index
    %c0_65 = arith.constant 0 : index
    %c0_66 = arith.constant 0 : index
    %226 = vector.load %arg17[%c1_64, %c0_65, %c0_66] : memref<8x2x32xf32, #tpu.memory_space<vmem>>, vector<1x2x32xf32>
    %227 = vector.shape_cast %226 : vector<1x2x32xf32> to vector<2x32xf32>
    %228 = vector.shape_cast %225 : vector<2x32xf32> to vector<1x2x32xf32>
    tpu.vector_store %arg17[%c1_64, %c0_65, %c0_66], %228 {strides = array<i32>} : memref<8x2x32xf32, #tpu.memory_space<vmem>>, vector<1x2x32xf32>,
    %229 = vector.extract_strided_slice %15 {offsets = [14, 0], sizes = [2, 256], strides = [1, 1]} : vector<16x256xf32> to vector<2x256xf32>
    %230 = vector.extract_strided_slice %20 {offsets = [0, 0], sizes = [2, 256], strides = [1, 1]} : vector<16x256xf32> to vector<2x256xf32>
    %231 = arith.addf %229, %230 : vector<2x256xf32>
    %cst_67 = arith.constant dense<0.000000e+00> : vector<2x256xf32>
    %232 = tpu.matmul %220, %21, %cst_67 {dimension_numbers = #tpu.dot_dimension_numbers<[1], [0], [0], [1], [0, 0, 1, 1], [], []>} : vector<2x64xf32>, vector<64x256xf32>, vector<2x256xf32> -> vector<2x256xf32>
    %233 = arith.addf %231, %232 : vector<2x256xf32>
    %234 = vector.broadcast %22 : vector<1x256xf32> to vector<2x256xf32>
    %235 = arith.mulf %234, %233 : vector<2x256xf32>
    %236 = math.tanh %235 : vector<2x256xf32>
    %237 = vector.broadcast %22 : vector<1x256xf32> to vector<2x256xf32>
    %238 = arith.mulf %237, %236 : vector<2x256xf32>
    %239 = vector.broadcast %23 : vector<1x256xf32> to vector<2x256xf32>
    %240 = arith.addf %238, %239 : vector<2x256xf32>
    %241 = vector.extract_strided_slice %240 {offsets = [0, 0], sizes = [2, 64], strides = [1, 1]} : vector<2x256xf32> to vector<2x64xf32>
    %242 = vector.extract_strided_slice %240 {offsets = [0, 64], sizes = [2, 64], strides = [1, 1]} : vector<2x256xf32> to vector<2x64xf32>
    %243 = vector.extract_strided_slice %240 {offsets = [0, 128], sizes = [2, 64], strides = [1, 1]} : vector<2x256xf32> to vector<2x64xf32>
    %244 = vector.extract_strided_slice %240 {offsets = [0, 192], sizes = [2, 64], strides = [1, 1]} : vector<2x256xf32> to vector<2x64xf32>
    %245 = arith.mulf %242, %218 : vector<2x64xf32>
    %246 = arith.mulf %241, %243 : vector<2x64xf32>
    %247 = arith.addf %245, %246 : vector<2x64xf32>
    %248 = math.tanh %247 : vector<2x64xf32>
    %249 = arith.mulf %244, %248 : vector<2x64xf32>
    %250 = vector.extract_strided_slice %249 {offsets = [0, 0], sizes = [2, 32], strides = [1, 1]} : vector<2x64xf32> to vector<2x32xf32>
    %c7_68 = arith.constant 7 : index
    %c0_69 = arith.constant 0 : index
    %c0_70 = arith.constant 0 : index
    %251 = vector.load %arg16[%c7_68, %c0_69, %c0_70] : memref<8x2x32xf32, #tpu.memory_space<vmem>>, vector<1x2x32xf32>
    %252 = vector.shape_cast %251 : vector<1x2x32xf32> to vector<2x32xf32>
    %253 = vector.shape_cast %250 : vector<2x32xf32> to vector<1x2x32xf32>
    tpu.vector_store %arg16[%c7_68, %c0_69, %c0_70], %253 {strides = array<i32>} : memref<8x2x32xf32, #tpu.memory_space<vmem>>, vector<1x2x32xf32>,
    %254 = vector.extract_strided_slice %249 {offsets = [0, 32], sizes = [2, 32], strides = [1, 1]} : vector<2x64xf32> to vector<2x32xf32>
    %c0_71 = arith.constant 0 : index
    %c0_72 = arith.constant 0 : index
    %c0_73 = arith.constant 0 : index
    %255 = vector.load %arg17[%c0_71, %c0_72, %c0_73] : memref<8x2x32xf32, #tpu.memory_space<vmem>>, vector<1x2x32xf32>
    %256 = vector.shape_cast %255 : vector<1x2x32xf32> to vector<2x32xf32>
    %257 = vector.shape_cast %254 : vector<2x32xf32> to vector<1x2x32xf32>
    tpu.vector_store %arg17[%c0_71, %c0_72, %c0_73], %257 {strides = array<i32>} : memref<8x2x32xf32, #tpu.memory_space<vmem>>, vector<1x2x32xf32>,
    %c0_74 = arith.constant 0 : index
    %c0_75 = arith.constant 0 : index
    %c0_76 = arith.constant 0 : index
    %258 = vector.load %arg16[%c0_74, %c0_75, %c0_76] : memref<8x2x32xf32, #tpu.memory_space<vmem>>, vector<8x2x32xf32>
    %c0_77 = arith.constant 0 : index
    %c0_78 = arith.constant 0 : index
    %c0_79 = arith.constant 0 : index
    %259 = vector.load %arg17[%c0_77, %c0_78, %c0_79] : memref<8x2x32xf32, #tpu.memory_space<vmem>>, vector<8x2x32xf32>
    %c0_80 = arith.constant 0 : index
    %c0_81 = arith.constant 0 : index
    %260 = vector.load %arg10[%c0_80, %c0_81] : memref<1x32xf32, #tpu.memory_space<vmem>>, vector<1x32xf32>
    %261 = vector.shape_cast %260 : vector<1x32xf32> to vector<1x1x32xf32>
    %262 = vector.broadcast %261 : vector<1x1x32xf32> to vector<8x2x32xf32>
    %263 = arith.mulf %258, %262 : vector<8x2x32xf32>
    %c0_82 = arith.constant 0 : index
    %c0_83 = arith.constant 0 : index
    %264 = vector.load %arg11[%c0_82, %c0_83] : memref<1x32xf32, #tpu.memory_space<vmem>>, vector<1x32xf32>
    %265 = vector.shape_cast %264 : vector<1x32xf32> to vector<1x1x32xf32>
    %266 = vector.broadcast %265 : vector<1x1x32xf32> to vector<8x2x32xf32>
    %267 = arith.mulf %259, %266 : vector<8x2x32xf32>
    %268 = arith.addf %263, %267 : vector<8x2x32xf32>
    %cst_84 = arith.constant dense<0.000000e+00> : vector<8x2xf32>
    %269 = vector.multi_reduction <add>, %268, %cst_84 [2] : vector<8x2x32xf32> to vector<8x2xf32>
    %270 = vector.shape_cast %269 : vector<8x2xf32> to vector<8x2x1xf32>
    %271 = vector.extract_strided_slice %270 {offsets = [0, 0, 0], sizes = [1, 2, 1], strides = [1, 1, 1]} : vector<8x2x1xf32> to vector<1x2x1xf32>
    %272 = vector.shape_cast %271 : vector<1x2x1xf32> to vector<2x1xf32>
    %273 = vector.extract_strided_slice %270 {offsets = [1, 0, 0], sizes = [1, 2, 1], strides = [1, 1, 1]} : vector<8x2x1xf32> to vector<1x2x1xf32>
    %274 = vector.shape_cast %273 : vector<1x2x1xf32> to vector<2x1xf32>
    %275 = vector.extract_strided_slice %270 {offsets = [2, 0, 0], sizes = [1, 2, 1], strides = [1, 1, 1]} : vector<8x2x1xf32> to vector<1x2x1xf32>
    %276 = vector.shape_cast %275 : vector<1x2x1xf32> to vector<2x1xf32>
    %277 = vector.extract_strided_slice %270 {offsets = [3, 0, 0], sizes = [1, 2, 1], strides = [1, 1, 1]} : vector<8x2x1xf32> to vector<1x2x1xf32>
    %278 = vector.shape_cast %277 : vector<1x2x1xf32> to vector<2x1xf32>
    %279 = vector.extract_strided_slice %270 {offsets = [4, 0, 0], sizes = [1, 2, 1], strides = [1, 1, 1]} : vector<8x2x1xf32> to vector<1x2x1xf32>
    %280 = vector.shape_cast %279 : vector<1x2x1xf32> to vector<2x1xf32>
    %281 = vector.extract_strided_slice %270 {offsets = [5, 0, 0], sizes = [1, 2, 1], strides = [1, 1, 1]} : vector<8x2x1xf32> to vector<1x2x1xf32>
    %282 = vector.shape_cast %281 : vector<1x2x1xf32> to vector<2x1xf32>
    %283 = vector.extract_strided_slice %270 {offsets = [6, 0, 0], sizes = [1, 2, 1], strides = [1, 1, 1]} : vector<8x2x1xf32> to vector<1x2x1xf32>
    %284 = vector.shape_cast %283 : vector<1x2x1xf32> to vector<2x1xf32>
    %285 = vector.extract_strided_slice %270 {offsets = [7, 0, 0], sizes = [1, 2, 1], strides = [1, 1, 1]} : vector<8x2x1xf32> to vector<1x2x1xf32>
    %286 = vector.shape_cast %285 : vector<1x2x1xf32> to vector<2x1xf32>
    %287 = arith.maximumf %272, %274 : vector<2x1xf32>
    %288 = arith.maximumf %276, %278 : vector<2x1xf32>
    %289 = arith.maximumf %280, %282 : vector<2x1xf32>
    %290 = arith.maximumf %284, %286 : vector<2x1xf32>
    %291 = arith.maximumf %287, %288 : vector<2x1xf32>
    %292 = arith.maximumf %289, %290 : vector<2x1xf32>
    %293 = arith.maximumf %291, %292 : vector<2x1xf32>
    %294 = arith.subf %272, %293 : vector<2x1xf32>
    %295 = math.exp %294 : vector<2x1xf32>
    %296 = arith.subf %274, %293 : vector<2x1xf32>
    %297 = math.exp %296 : vector<2x1xf32>
    %298 = arith.subf %276, %293 : vector<2x1xf32>
    %299 = math.exp %298 : vector<2x1xf32>
    %300 = arith.subf %278, %293 : vector<2x1xf32>
    %301 = math.exp %300 : vector<2x1xf32>
    %302 = arith.subf %280, %293 : vector<2x1xf32>
    %303 = math.exp %302 : vector<2x1xf32>
    %304 = arith.subf %282, %293 : vector<2x1xf32>
    %305 = math.exp %304 : vector<2x1xf32>
    %306 = arith.subf %284, %293 : vector<2x1xf32>
    %307 = math.exp %306 : vector<2x1xf32>
    %308 = arith.subf %286, %293 : vector<2x1xf32>
    %309 = math.exp %308 : vector<2x1xf32>
    %310 = arith.addf %295, %297 : vector<2x1xf32>
    %311 = arith.addf %299, %301 : vector<2x1xf32>
    %312 = arith.addf %303, %305 : vector<2x1xf32>
    %313 = arith.addf %307, %309 : vector<2x1xf32>
    %314 = arith.addf %310, %311 : vector<2x1xf32>
    %315 = arith.addf %312, %313 : vector<2x1xf32>
    %316 = arith.addf %314, %315 : vector<2x1xf32>
    %317 = tpu.reciprocal %316 {approx = true} : vector<2x1xf32> -> vector<2x1xf32>
    %318 = arith.mulf %295, %317 : vector<2x1xf32>
    %319 = arith.mulf %297, %317 : vector<2x1xf32>
    %320 = arith.mulf %299, %317 : vector<2x1xf32>
    %321 = arith.mulf %301, %317 : vector<2x1xf32>
    %322 = arith.mulf %303, %317 : vector<2x1xf32>
    %323 = arith.mulf %305, %317 : vector<2x1xf32>
    %324 = arith.mulf %307, %317 : vector<2x1xf32>
    %325 = arith.mulf %309, %317 : vector<2x1xf32>
    %326 = vector.extract_strided_slice %258 {offsets = [0, 0, 0], sizes = [1, 2, 32], strides = [1, 1, 1]} : vector<8x2x32xf32> to vector<1x2x32xf32>
    %327 = vector.shape_cast %326 : vector<1x2x32xf32> to vector<2x32xf32>
    %328 = vector.broadcast %318 : vector<2x1xf32> to vector<2x32xf32>
    %329 = arith.mulf %328, %327 : vector<2x32xf32>
    %330 = vector.extract_strided_slice %258 {offsets = [1, 0, 0], sizes = [1, 2, 32], strides = [1, 1, 1]} : vector<8x2x32xf32> to vector<1x2x32xf32>
    %331 = vector.shape_cast %330 : vector<1x2x32xf32> to vector<2x32xf32>
    %332 = vector.broadcast %319 : vector<2x1xf32> to vector<2x32xf32>
    %333 = arith.mulf %332, %331 : vector<2x32xf32>
    %334 = vector.extract_strided_slice %258 {offsets = [2, 0, 0], sizes = [1, 2, 32], strides = [1, 1, 1]} : vector<8x2x32xf32> to vector<1x2x32xf32>
    %335 = vector.shape_cast %334 : vector<1x2x32xf32> to vector<2x32xf32>
    %336 = vector.broadcast %320 : vector<2x1xf32> to vector<2x32xf32>
    %337 = arith.mulf %336, %335 : vector<2x32xf32>
    %338 = vector.extract_strided_slice %258 {offsets = [3, 0, 0], sizes = [1, 2, 32], strides = [1, 1, 1]} : vector<8x2x32xf32> to vector<1x2x32xf32>
    %339 = vector.shape_cast %338 : vector<1x2x32xf32> to vector<2x32xf32>
    %340 = vector.broadcast %321 : vector<2x1xf32> to vector<2x32xf32>
    %341 = arith.mulf %340, %339 : vector<2x32xf32>
    %342 = vector.extract_strided_slice %258 {offsets = [4, 0, 0], sizes = [1, 2, 32], strides = [1, 1, 1]} : vector<8x2x32xf32> to vector<1x2x32xf32>
    %343 = vector.shape_cast %342 : vector<1x2x32xf32> to vector<2x32xf32>
    %344 = vector.broadcast %322 : vector<2x1xf32> to vector<2x32xf32>
    %345 = arith.mulf %344, %343 : vector<2x32xf32>
    %346 = vector.extract_strided_slice %258 {offsets = [5, 0, 0], sizes = [1, 2, 32], strides = [1, 1, 1]} : vector<8x2x32xf32> to vector<1x2x32xf32>
    %347 = vector.shape_cast %346 : vector<1x2x32xf32> to vector<2x32xf32>
    %348 = vector.broadcast %323 : vector<2x1xf32> to vector<2x32xf32>
    %349 = arith.mulf %348, %347 : vector<2x32xf32>
    %350 = vector.extract_strided_slice %258 {offsets = [6, 0, 0], sizes = [1, 2, 32], strides = [1, 1, 1]} : vector<8x2x32xf32> to vector<1x2x32xf32>
    %351 = vector.shape_cast %350 : vector<1x2x32xf32> to vector<2x32xf32>
    %352 = vector.broadcast %324 : vector<2x1xf32> to vector<2x32xf32>
    %353 = arith.mulf %352, %351 : vector<2x32xf32>
    %354 = vector.extract_strided_slice %258 {offsets = [7, 0, 0], sizes = [1, 2, 32], strides = [1, 1, 1]} : vector<8x2x32xf32> to vector<1x2x32xf32>
    %355 = vector.shape_cast %354 : vector<1x2x32xf32> to vector<2x32xf32>
    %356 = vector.broadcast %325 : vector<2x1xf32> to vector<2x32xf32>
    %357 = arith.mulf %356, %355 : vector<2x32xf32>
    %358 = arith.addf %329, %333 : vector<2x32xf32>
    %359 = arith.addf %337, %341 : vector<2x32xf32>
    %360 = arith.addf %345, %349 : vector<2x32xf32>
    %361 = arith.addf %353, %357 : vector<2x32xf32>
    %362 = arith.addf %358, %359 : vector<2x32xf32>
    %363 = arith.addf %360, %361 : vector<2x32xf32>
    %364 = arith.addf %362, %363 : vector<2x32xf32>
    %365 = vector.extract_strided_slice %259 {offsets = [0, 0, 0], sizes = [1, 2, 32], strides = [1, 1, 1]} : vector<8x2x32xf32> to vector<1x2x32xf32>
    %366 = vector.shape_cast %365 : vector<1x2x32xf32> to vector<2x32xf32>
    %367 = vector.broadcast %318 : vector<2x1xf32> to vector<2x32xf32>
    %368 = arith.mulf %367, %366 : vector<2x32xf32>
    %369 = vector.extract_strided_slice %259 {offsets = [1, 0, 0], sizes = [1, 2, 32], strides = [1, 1, 1]} : vector<8x2x32xf32> to vector<1x2x32xf32>
    %370 = vector.shape_cast %369 : vector<1x2x32xf32> to vector<2x32xf32>
    %371 = vector.broadcast %319 : vector<2x1xf32> to vector<2x32xf32>
    %372 = arith.mulf %371, %370 : vector<2x32xf32>
    %373 = vector.extract_strided_slice %259 {offsets = [2, 0, 0], sizes = [1, 2, 32], strides = [1, 1, 1]} : vector<8x2x32xf32> to vector<1x2x32xf32>
    %374 = vector.shape_cast %373 : vector<1x2x32xf32> to vector<2x32xf32>
    %375 = vector.broadcast %320 : vector<2x1xf32> to vector<2x32xf32>
    %376 = arith.mulf %375, %374 : vector<2x32xf32>
    %377 = vector.extract_strided_slice %259 {offsets = [3, 0, 0], sizes = [1, 2, 32], strides = [1, 1, 1]} : vector<8x2x32xf32> to vector<1x2x32xf32>
    %378 = vector.shape_cast %377 : vector<1x2x32xf32> to vector<2x32xf32>
    %379 = vector.broadcast %321 : vector<2x1xf32> to vector<2x32xf32>
    %380 = arith.mulf %379, %378 : vector<2x32xf32>
    %381 = vector.extract_strided_slice %259 {offsets = [4, 0, 0], sizes = [1, 2, 32], strides = [1, 1, 1]} : vector<8x2x32xf32> to vector<1x2x32xf32>
    %382 = vector.shape_cast %381 : vector<1x2x32xf32> to vector<2x32xf32>
    %383 = vector.broadcast %322 : vector<2x1xf32> to vector<2x32xf32>
    %384 = arith.mulf %383, %382 : vector<2x32xf32>
    %385 = vector.extract_strided_slice %259 {offsets = [5, 0, 0], sizes = [1, 2, 32], strides = [1, 1, 1]} : vector<8x2x32xf32> to vector<1x2x32xf32>
    %386 = vector.shape_cast %385 : vector<1x2x32xf32> to vector<2x32xf32>
    %387 = vector.broadcast %323 : vector<2x1xf32> to vector<2x32xf32>
    %388 = arith.mulf %387, %386 : vector<2x32xf32>
    %389 = vector.extract_strided_slice %259 {offsets = [6, 0, 0], sizes = [1, 2, 32], strides = [1, 1, 1]} : vector<8x2x32xf32> to vector<1x2x32xf32>
    %390 = vector.shape_cast %389 : vector<1x2x32xf32> to vector<2x32xf32>
    %391 = vector.broadcast %324 : vector<2x1xf32> to vector<2x32xf32>
    %392 = arith.mulf %391, %390 : vector<2x32xf32>
    %393 = vector.extract_strided_slice %259 {offsets = [7, 0, 0], sizes = [1, 2, 32], strides = [1, 1, 1]} : vector<8x2x32xf32> to vector<1x2x32xf32>
    %394 = vector.shape_cast %393 : vector<1x2x32xf32> to vector<2x32xf32>
    %395 = vector.broadcast %325 : vector<2x1xf32> to vector<2x32xf32>
    %396 = arith.mulf %395, %394 : vector<2x32xf32>
    %397 = arith.addf %368, %372 : vector<2x32xf32>
    %398 = arith.addf %376, %380 : vector<2x32xf32>
    %399 = arith.addf %384, %388 : vector<2x32xf32>
    %400 = arith.addf %392, %396 : vector<2x32xf32>
    %401 = arith.addf %397, %398 : vector<2x32xf32>
    %402 = arith.addf %399, %400 : vector<2x32xf32>
    %403 = arith.addf %401, %402 : vector<2x32xf32>
    %c0_85 = arith.constant 0 : index
    %c0_86 = arith.constant 0 : index
    %404 = vector.load %arg12[%c0_85, %c0_86] : memref<32x8xf32, #tpu.memory_space<vmem>>, vector<32x8xf32>
    %cst_87 = arith.constant dense<0.000000e+00> : vector<2x8xf32>
    %405 = tpu.matmul %364, %404, %cst_87 {dimension_numbers = #tpu.dot_dimension_numbers<[1], [0], [0], [1], [0, 0, 1, 1], [], []>} : vector<2x32xf32>, vector<32x8xf32>, vector<2x8xf32> -> vector<2x8xf32>
    %c0_88 = arith.constant 0 : index
    %c0_89 = arith.constant 0 : index
    %406 = vector.load %arg13[%c0_88, %c0_89] : memref<32x8xf32, #tpu.memory_space<vmem>>, vector<32x8xf32>
    %cst_90 = arith.constant dense<0.000000e+00> : vector<2x8xf32>
    %407 = tpu.matmul %403, %406, %cst_90 {dimension_numbers = #tpu.dot_dimension_numbers<[1], [0], [0], [1], [0, 0, 1, 1], [], []>} : vector<2x32xf32>, vector<32x8xf32>, vector<2x8xf32> -> vector<2x8xf32>
    %408 = arith.addf %405, %407 : vector<2x8xf32>
    %c0_91 = arith.constant 0 : index
    %c0_92 = arith.constant 0 : index
    %409 = vector.load %arg14[%c0_91, %c0_92] : memref<1x8xf32, #tpu.memory_space<vmem>>, vector<1x8xf32>
    %410 = vector.broadcast %409 : vector<1x8xf32> to vector<2x8xf32>
    %411 = arith.addf %408, %410 : vector<2x8xf32>
    %c0_93 = arith.constant 0 : index
    %c0_94 = arith.constant 0 : index
    %412 = vector.load %arg15[%c0_93, %c0_94] : memref<2x8xf32, #tpu.memory_space<vmem>>, vector<2x8xf32>
    tpu.vector_store %arg15[%c0_93, %c0_94], %411 {strides = array<i32>} : memref<2x8xf32, #tpu.memory_space<vmem>>, vector<2x8xf32>,
    return
  }
}

</mosaic_0001>

<bundles_post_ra>
// kernel: tpu_custom_call.1
= control target key start
LH: loop header
LB: loop body
LE: loop exit
PB: predicated region body
PF: predicated region fallthrough
CT: control target
= control target key end

     0   :  { %20 = vsyncpa [#allocation5], 0  ;;  %s2000_s0 = inlined_call_operand.hbm [shape: f32[16,16], index: 0, kind: input, shape index: {}]   ;;  %s2001_s1 = inlined_call_operand.hbm [shape: f32[16,16], index: 1, kind: input, shape index: {}]   ;;  %s2002_s2 = inlined_call_operand.vmem [shape: f32[1,16], index: 2, kind: input, shape index: {}]   ;;  %s2003_s3 = inlined_call_operand.vmem [shape: f32[16,256], index: 3, kind: input, shape index: {}]   ;;  %s2004_s4 = inlined_call_operand.vmem [shape: f32[1,256], index: 4, kind: input, shape index: {}]   ;;  %s2005_s5 = inlined_call_operand.vmem [shape: f32[16,256], index: 5, kind: input, shape index: {}]   ;;  %s2006_s6 = inlined_call_operand.vmem [shape: f32[1,256], index: 6, kind: input, shape index: {}]   ;;  %s2007_s7 = inlined_call_operand.hbm [shape: f32[64,256], index: 7, kind: input, shape index: {}]   ;;  %s2008_s8 = inlined_call_operand.vmem [shape: f32[1,256], index: 8, kind: input, shape index: {}]   ;;  %s2009_s9 = inlined_call_operand.vmem [shape: f32[1,256], index: 9, kind: input, shape index: {}]   ;;  %s2010_s10 = inlined_call_operand.vmem [shape: f32[1,32], index: 10, kind: input, shape index: {}]   ;;  %s2011_s11 = inlined_call_operand.vmem [shape: f32[1,32], index: 11, kind: input, shape index: {}]   ;;  %s2012_s12 = inlined_call_operand.vmem [shape: f32[32,8], index: 12, kind: input, shape index: {}]   ;;  %s2013_s13 = inlined_call_operand.vmem [shape: f32[32,8], index: 13, kind: input, shape index: {}]   ;;  %s2014_s14 = inlined_call_operand.vmem [shape: f32[1,8], index: 14, kind: input, shape index: {}]   ;;  %s2015_s15 = inlined_call_operand.hbm [shape: f32[2,8], index: 15, kind: output, shape index: {}]  }
   0x1   :  { %21 = vsyncpa [#allocation8], 0 }
   0x2   :  { %22 = vsyncpa [#allocation6], 0  ;;  %s40_s20 = sshll.u32 %s2001_s1, 4  ;;  %s1408_s21 = smov [#allocation7]   ;;  %s41_s20 = int_to_ptr.hbm [resolvable:$true] %s40_s20 }
   0x3   :  { %s42_s22 = sshll.u32 %s1408_s21, 4  ;;  %s27_s25 = sshll.u32 %s2000_s0, 4  ;;  %s43_s22 = int_to_ptr.vmem [resolvable:$true] %s42_s22  ;;  %s28_s25 = int_to_ptr.hbm [resolvable:$true] %s27_s25 }
   0x4   :  { %s1409_s26 = smov 128   ;;  %s1410_s27 = smov 8  }
   0x5   :  { %48 = dma.hbm_to_vmem [thread:$0]  %s41_s20, 256, %s43_s22, [#allocation8], %s1409_s26, %s1409_s26, %s1410_s27  }
   0x6   :  { %s1411_s28 = smov [#allocation4]   ;;  %s63_s17 = sshll.u32 %s2007_s7, 4  ;;  %s64_s17 = int_to_ptr.hbm [resolvable:$true] %s63_s17 }
   0x7   :  { %s29_s29 = sshll.u32 %s1411_s28, 4  ;;  %s1412_s1 = smov [#allocation9]   ;;  %s30_s29 = int_to_ptr.vmem [resolvable:$true] %s29_s29 }
   0x8   :  { %35 = dma.hbm_to_vmem [thread:$0]  %s28_s25, 256, %s30_s29, [#allocation5], %s1409_s26, %s1409_s26, %s1410_s27  }
   0x9   :  { %s65_s18 = sshll.u32 %s1412_s1, 4  ;;  %s1413_s19 = smov 256   ;;  %s66_s18 = int_to_ptr.vmem [resolvable:$true] %s65_s18 }
   0xa   :  { %s1414_s21 = smov 16  }
   0xb   :  { %71 = dma.hbm_to_vmem [thread:$0]  %s64_s17, 2048, %s66_s18, [#allocation8], %s1413_s19, %s1413_s19, %s1414_s21  }
   0xc   :  { %1402 = dma.done.wait [#allocation5], 256  }
   0xd   :  { %1403 = vsyncadd [#allocation5], 4294967040 }
   0xe   :  { %1404 = dma.done.wait [#allocation8], 2304  }
   0xf   :  { %1405 = vsyncadd [#allocation8], 4294964992  ;;  %v101_v0 = vld [vmem:[#allocation7 + $0x8] sm:$0xff]  ;;  %v100_v1 = vld [vmem:[#allocation7] sm:$0xff]  ;;  %vm106_vm0 = vcmask 130048   ;;  %v1415_v37 = vmov 0.0  }
  0x10   :  { %127 = vmatpush.msra.mxu0 %v101_v0  ;;  %1223 = vmatpush.msra.mxu3 %v101_v0  ;;  %v98_v2 = vld [vmem:[#allocation4] sm:$0xff]  ;;  %v99_v3 = vld [vmem:[#allocation4 + $0x8] sm:$0xff]  ;;  %v206_v4 = vld [vmem:[%s2005_s5 + $0x10] sm:$0xff]  ;;  %s1416_s20 = smov 64   ;;  %vm363_vm3 = vcmask 254976   ;;  %vm286_vm4 = vcmask 523264  }
  0x11   :  { %v144_v5 = vld [vmem:[%s2003_s3 + $0x10] sm:$0xff]  ;;  %v145_v6 = vld [vmem:[%s2003_s3 + $0x18] sm:$0xff]  ;;  %v204_v8 = vld [vmem:[%s2005_s5] sm:$0xff]  ;;  %vm536_vm5 = vcmask 259076   ;;  %vm621_vm6 = vcmask 261126   ;;  %vm451_vm7 = vcmask 257026  }
  0x12   :  { %128 = vmatpush.msra.mxu0 %v100_v1  ;;  %1224 = vmatpush.msra.mxu3 %v100_v1  ;;  %v207_v7 = vld [vmem:[%s2005_s5 + $0x18] sm:$0xff]  ;;  %v142_v9 = vld [vmem:[%s2003_s3] sm:$0xff]  ;;  %v143_v10 = vld [vmem:[%s2003_s3 + $0x8] sm:$0xff]  ;;  %vm1125_vm8 = vcmask 261120   ;;  %s1418_s0 = smov [#allocation10]   ;;  %s1186_s7 = sshll.u32 %s2015_s15, 4  ;;  %s1187_s7 = int_to_ptr.hbm [resolvable:$true] %s1186_s7 }
  0x13   :  { %1197 = vmatmul.msk.f32.vlgmr.msra.gmra.mxu0 %vm106_vm0, %v98_v2  ;;  %1198 = vmatmul.msk.f32.vlgmr.msra.gmra.mxu3 %vm106_vm0, %v99_v3  ;;  %v205_v11 = vld [vmem:[%s2005_s5 + $0x8] sm:$0xff]  ;;  %v1534_v12 = vld [vmem:[#allocation9 + $0x78] sm:$0xff]  ;;  %v1542_v15 = vld [vmem:[#allocation9 + $0x70] sm:$0xff]  ;;  %vm1177_vm9 = vcmask 58368  }
  0x14   :  { %228 = vmatpush.msrb.mxu3 %v206_v4  ;;  %172 = vmatpush.msra.mxu1 %v144_v5  ;;  %v1538_v13 = vld [vmem:[#allocation9 + $0x68] sm:$0xff]  ;;  %v1540_v14 = vld [vmem:[#allocation9 + $0x58] sm:$0xff]  ;;  %v1546_v16 = vld [vmem:[#allocation9 + $0x60] sm:$0xff] }
  0x15   :  { %195 = vmatpush.msra.mxu2 %v145_v6  ;;  %251 = vmatpush.msrb.mxu0 %v207_v7  ;;  %v1548_v17 = vld [vmem:[#allocation9 + $0x48] sm:$0xff]  ;;  %v1557_v18 = vld [vmem:[#allocation9 + $0x38] sm:$0xff]  ;;  %v1559_v19 = vld [vmem:[#allocation9 + $0x50] sm:$0xff] }
  0x16   :  { %229 = vmatpush.msrb.mxu3 %v204_v8  ;;  %173 = vmatpush.msra.mxu1 %v142_v9  ;;  %v1561_v20 = vld [vmem:[#allocation9 + $0x28] sm:$0xff]  ;;  %v1566_v21 = vld [vmem:[#allocation9 + $0x40] sm:$0xff]  ;;  %v1568_v22 = vld [vmem:[#allocation9 + $0x18] sm:$0xff] }
  0x17   :  { %196 = vmatpush.msra.mxu2 %v143_v10  ;;  %252 = vmatpush.msrb.mxu0 %v205_v11  ;;  %v1570_v23 = vld [vmem:[#allocation9 + $0x30] sm:$0xff]  ;;  %v1576_v24 = vld [vmem:[#allocation9 + $0x8] sm:$0xff]  ;;  %v1578_v25 = vld [vmem:[#allocation9 + $0x20] sm:$0xff] }
  0x18   :  { %298 = vmatpush.msrb.mxu1 %v1542_v15  ;;  %386 = vmatpush.msra.mxu3 %v1542_v15  ;;  %v1588_v26 = vld [vmem:[#allocation9 + $0x10] sm:$0xff]  ;;  %v1590_v27 = vld [vmem:[#allocation9] sm:$0xff] }
  0x19   :  { %318 = vmatpush.msrb.mxu2 %v1534_v12  ;;  %406 = vmatpush.msra.mxu0 %v1534_v12  ;;  %v1236_v28 = vld [vmem:[%s2002_s2] ss:$0 sm:$0xff] }
  0x1a   :  { %299 = vmatpush.msrb.mxu1 %v1546_v16  ;;  %387 = vmatpush.msra.mxu3 %v1546_v16  ;;  %v208_v38 = vld [vmem:[%s2006_s6] sm:$0x3] }
  0x1b   :  { %319 = vmatpush.msrb.mxu2 %v1538_v13  ;;  %407 = vmatpush.msra.mxu0 %v1538_v13  ;;  %v211_v39 = vperm.slane %v208_v38, 1  ;;  %v146_v43 = vld [vmem:[%s2004_s4] sm:$0x3]  ;;  %v210_v44 = vperm.slane %v208_v38, 0  ;;  %s1184_s4 = sshll.u32 %s1418_s0, 4  ;;  %s1185_s4 = int_to_ptr.vmem [resolvable:$true] %s1184_s4 }
  0x1c   :  { %300 = vmatpush.msrb.mxu1 %v1559_v19  ;;  %388 = vmatpush.msra.mxu3 %v1559_v19  ;;  %v148_v46 = vperm.slane %v146_v43, 0  ;;  %v149_v48 = vperm.slane %v146_v43, 1  ;;  %v276_v5 = vld [vmem:[%s2008_s8] sm:$0x3] }
  0x1d   :  { %320 = vmatpush.msrb.mxu2 %v1540_v14  ;;  %408 = vmatpush.msra.mxu0 %v1540_v14 }
  0x1e   :  { %301 = vmatpush.msrb.mxu1 %v1566_v21  ;;  %389 = vmatpush.msra.mxu3 %v1566_v21 }
  0x1f   :  { %321 = vmatpush.msrb.mxu2 %v1548_v17  ;;  %409 = vmatpush.msra.mxu0 %v1548_v17 }
  0x20   :  { %302 = vmatpush.msrb.mxu1 %v1570_v23  ;;  %390 = vmatpush.msra.mxu3 %v1570_v23 }
  0x21   :  { %322 = vmatpush.msrb.mxu2 %v1557_v18  ;;  %410 = vmatpush.msra.mxu0 %v1557_v18 }
  0x22   :  { %303 = vmatpush.msrb.mxu1 %v1578_v25  ;;  %391 = vmatpush.msra.mxu3 %v1578_v25 }
  0x23   :  { %323 = vmatpush.msrb.mxu2 %v1561_v20  ;;  %411 = vmatpush.msra.mxu0 %v1561_v20 }
  0x24   :  { %304 = vmatpush.msrb.mxu1 %v1588_v26  ;;  %392 = vmatpush.msra.mxu3 %v1588_v26 }
  0x25   :  { %324 = vmatpush.msrb.mxu2 %v1568_v22  ;;  %412 = vmatpush.msra.mxu0 %v1568_v22 }
  0x26   :  { %305 = vmatpush.msrb.mxu1 %v1590_v27  ;;  %393 = vmatpush.msra.mxu3 %v1590_v27 }
  0x27   :  { %325 = vmatpush.msrb.mxu2 %v1576_v24  ;;  %413 = vmatpush.msra.mxu0 %v1576_v24 }
  0x90   :  { %v130_v29 = vpop.f32.mrf.mxu0 }
  0x91   :  { %v131_v30 = vadd.f32 %v1236_v28, %v130_v29 }
  0x93   :  { %vm136_vm1 = vcmp.gt.f32.partialorder %v131_v30, 0.0  ;;  %v138_v31 = vmul.f32 0.1, %v131_v30 }
  0x95   :  { %v140_v32 = vsel %vm136_vm1, %v131_v30, %v138_v31  ;;  %v1684_v31 = vperm.slane %v276_v5, 1 }
  0x96   :  { %v133_v33 = vpop.f32.mrf.mxu3  ;;  %1199 = vmatmul.msk.f32.vlgmr.msra.gmra.mxu1 %vm106_vm0, %v140_v32  ;;  %1201 = vmatmul.msk.f32.vlgmr.msra.gmra.mxu2 %vm106_vm0, %v140_v32 }
  0x97   :  { %v134_v34 = vadd.f32 %v1236_v28, %v133_v33  ;;  %1203 = vmatmul.msk.f32.vlgmr.msrb.gmra.mxu3 %vm106_vm0, %v140_v32  ;;  %1205 = vmatmul.msk.f32.vlgmr.msrb.gmra.mxu0 %vm106_vm0, %v140_v32  ;;  %v1678_v28 = vperm.slane %v276_v5, 0 }
  0x98   :  { %471 = vmatpush.msra.mxu1 %v1542_v15  ;;  %491 = vmatpush.msra.mxu2 %v1534_v12 }
  0x99   :  { %v139_v35 = vmul.f32 0.1, %v134_v34  ;;  %556 = vmatpush.msrb.mxu3 %v1542_v15  ;;  %576 = vmatpush.msrb.mxu0 %v1534_v12  ;;  %vm137_vm2 = vcmp.gt.f32.partialorder %v134_v34, 0.0 }
  0x9a   :  { %472 = vmatpush.msra.mxu1 %v1546_v16  ;;  %492 = vmatpush.msra.mxu2 %v1538_v13 }
  0x9b   :  { %557 = vmatpush.msrb.mxu3 %v1546_v16  ;;  %577 = vmatpush.msrb.mxu0 %v1538_v13  ;;  %v141_v36 = vsel %vm137_vm2, %v134_v34, %v139_v35 }
  0x9c   :  { %473 = vmatpush.msra.mxu1 %v1559_v19  ;;  %493 = vmatpush.msra.mxu2 %v1540_v14 }
  0x9d   :  { %558 = vmatpush.msrb.mxu3 %v1559_v19  ;;  %578 = vmatpush.msrb.mxu0 %v1540_v14 }
  0x9e   :  { %1200 = vmatmul.msk.f32.gmra.mxu1 %vm106_vm0, %v141_v36  ;;  %1202 = vmatmul.msk.f32.gmra.mxu2 %vm106_vm0, %v141_v36 }
  0x9f   :  { %1204 = vmatmul.msk.f32.gmra.mxu3 %vm106_vm0, %v141_v36  ;;  %1206 = vmatmul.msk.f32.gmra.mxu0 %vm106_vm0, %v141_v36 }
  0xa0   :  { %474 = vmatpush.msra.mxu1 %v1566_v21  ;;  %494 = vmatpush.msra.mxu2 %v1548_v17 }
  0xa1   :  { %559 = vmatpush.msrb.mxu3 %v1566_v21  ;;  %579 = vmatpush.msrb.mxu0 %v1548_v17 }
  0xa2   :  { %475 = vmatpush.msra.mxu1 %v1570_v23  ;;  %495 = vmatpush.msra.mxu2 %v1557_v18 }
  0xa3   :  { %560 = vmatpush.msrb.mxu3 %v1570_v23  ;;  %580 = vmatpush.msrb.mxu0 %v1557_v18 }
  0xa4   :  { %476 = vmatpush.msra.mxu1 %v1578_v25  ;;  %496 = vmatpush.msra.mxu2 %v1561_v20 }
  0xa5   :  { %561 = vmatpush.msrb.mxu3 %v1578_v25  ;;  %581 = vmatpush.msrb.mxu0 %v1561_v20 }
  0xa6   :  { %326 = vmatmul.f32.vlgmr.msrb.gmra.mxu2 %v1415_v37  ;;  %306 = vmatmul.f32.vlgmr.msrb.gmra.mxu1 %v1415_v37  ;;  %v277_v37 = vld [vmem:[%s2009_s9] sm:$0x3]  ;;  %s1417_s9 = smov 32  }
  0xa7   :  { %477 = vmatpush.msra.mxu1 %v1588_v26  ;;  %497 = vmatpush.msra.mxu2 %v1568_v22 }
  0xa8   :  { %562 = vmatpush.msrb.mxu3 %v1588_v26  ;;  %582 = vmatpush.msrb.mxu0 %v1568_v22 }
  0xa9   :  { %478 = vmatpush.msra.mxu1 %v1590_v27  ;;  %498 = vmatpush.msra.mxu2 %v1576_v24 }
  0xaa   :  { %563 = vmatpush.msrb.mxu3 %v1590_v27  ;;  %583 = vmatpush.msrb.mxu0 %v1576_v24 }
  0xab   :  { %649 = vmatpush.msrb.mxu1 %v1542_v15  ;;  %669 = vmatpush.msrb.mxu2 %v1534_v12 }
  0xad   :  { %650 = vmatpush.msrb.mxu1 %v1546_v16  ;;  %670 = vmatpush.msrb.mxu2 %v1538_v13 }
  0xaf   :  { %651 = vmatpush.msrb.mxu1 %v1559_v19  ;;  %671 = vmatpush.msrb.mxu2 %v1540_v14 }
  0xb1   :  { %652 = vmatpush.msrb.mxu1 %v1566_v21  ;;  %672 = vmatpush.msrb.mxu2 %v1548_v17 }
  0xb3   :  { %653 = vmatpush.msrb.mxu1 %v1570_v23  ;;  %673 = vmatpush.msrb.mxu2 %v1557_v18 }
  0xb5   :  { %654 = vmatpush.msrb.mxu1 %v1578_v25  ;;  %674 = vmatpush.msrb.mxu2 %v1561_v20 }
  0xb7   :  { %655 = vmatpush.msrb.mxu1 %v1588_v26  ;;  %675 = vmatpush.msrb.mxu2 %v1568_v22 }
  0xb9   :  { %656 = vmatpush.msrb.mxu1 %v1590_v27  ;;  %676 = vmatpush.msrb.mxu2 %v1576_v24 }
 0x113   :  { %v175_v40 = vpop.f32.mrf.mxu1 }
 0x114   :  { %v254_v41 = vpop.f32.mrf.mxu0  ;;  %v176_v7 = vadd.f32 %v175_v40, %v148_v46  ;;  %v1695_v40 = vperm.slane %v277_v37, 1 }
 0x115   :  { %v255_v42 = vadd.f32 %v254_v41, %v211_v39 }
 0x117   :  { %v631_v62 = vrot.slane %v255_v42, 6  ;;  %v715_v63 = vrot.slane %v255_v42, 2 }
 0x119   :  { %v198_v45 = vpop.f32.mrf.mxu2 }
 0x11a   :  { %v231_v47 = vpop.f32.mrf.mxu3  ;;  %v199_v56 = vadd.f32 %v198_v45, %v149_v48 }
 0x11b   :  { %v232_v49 = vadd.f32 %v231_v47, %v210_v44  ;;  %v178_v50 = vpop.f32.mrf.mxu1 }
 0x11c   :  { %v179_v51 = vadd.f32 %v178_v50, %v148_v46  ;;  %v257_v52 = vpop.f32.mrf.mxu0 }
 0x11d   :  { %v630_v53 = vrot.slane %v232_v49, 6  ;;  %v714_v54 = vrot.slane %v232_v49, 2  ;;  %v258_v55 = vadd.f32 %v257_v52, %v211_v39  ;;  %v1693_v39 = vperm.slane %v277_v37, 0 }
 0x11f   :  { %v1663_v57 = vadd.f32 %v714_v54, %v179_v51  ;;  %v371_v58 = vrot.slane %v258_v55, 2  ;;  %v1665_v59 = vadd.f32 %v630_v53, %v179_v51  ;;  %v281_v3 = vrot.slane %v258_v55, 6 }
 0x121   :  { %v201_v60 = vpop.f32.mrf.mxu2  ;;  %v1667_v61 = vadd.f32 %v371_v58, %v199_v56  ;;  %v1682_v30 = vadd.f32 %v281_v3, %v199_v56 }
 0x122   :  { %v202_v0 = vadd.f32 %v201_v60, %v149_v48  ;;  %v234_v1 = vpop.f32.mrf.mxu3 }
 0x123   :  { %v235_v2 = vadd.f32 %v234_v1, %v210_v44  ;;  %v307_v10 = vpop.f32.mrf.mxu1 }
 0x124   :  { %v1669_v4 = vadd.f32 %v715_v63, %v202_v0  ;;  %v1674_v6 = vadd.f32 %v631_v62, %v202_v0 }
 0x125   :  { %v280_v8 = vrot.slane %v235_v2, 6  ;;  %v370_v9 = vrot.slane %v235_v2, 2 }
 0x127   :  { %v1676_v11 = vadd.f32 %v280_v8, %v176_v7  ;;  %v1680_v29 = vadd.f32 %v370_v9, %v176_v7 }
 0x129   :  { %v330_v32 = vadd.f32 %v307_v10, %v1676_v11  ;;  %v327_v33 = vpop.f32.mrf.mxu2 }
 0x12a   :  { %v331_v34 = vadd.f32 %v327_v33, %v1682_v30 }
 0x12b   :  { %v337_v35 = vmul.f32 %v1678_v28, %v330_v32 }
 0x12c   :  { %v338_v36 = vmul.f32 %v1684_v31, %v331_v34 }
 0x12d   :  { %1240 = vtanh.f32 %v337_v35 }
 0x12e   :  { %1242 = vtanh.f32 %v338_v36 }
 0x133   :  { %v1241_v38 = vpop.eup %1240 }
 0x134   :  { %v1243_v41 = vpop.eup %1242  ;;  %v341_v42 = vmul.f32 %v1241_v38, %v1678_v28 }
 0x135   :  { %v342_v43 = vmul.f32 %v1243_v41, %v1684_v31 }
 0x136   :  { %v348_v44 = vadd.f32 %v1693_v39, %v341_v42 }
 0x137   :  { %v349_v45 = vadd.f32 %v1695_v40, %v342_v43 }
 0x138   :  { %v350_v47 = vmul.f32 0.0, %v348_v44 }
 0x139   :  { %v351_v46 = vmul.f32 %v349_v45, %v348_v44 }
 0x13b   :  { %353 = vrot.lane.b32.xlu0 %v351_v46, %s1416_s20 }
 0x1ad   :  { %v354_v48 = vpop.permute.xlu0 %353 }
 0x1ae   :  { %v356_v49 = vadd.f32 %v354_v48, %v350_v47 }
 0x1b0   :  { %1244 = vtanh.f32 %v356_v49  ;;  %v435_v5 = vrot.slane %v356_v49, 6 }
 0x1b6   :  { %v1245_v50 = vpop.eup %1244 }
 0x1b7   :  { %v1702_v51 = vmul.f32 %v1245_v50, %v349_v45 }
 0x1b9   :  { %360 = vrot.lane.b32.xlu0 %v1702_v51, %s1416_s20 }
 0x22b   :  { %v361_v52 = vpop.permute.xlu0 %360 }
 0x22c   :  { %364 = vst.msk [vmem:[#allocation2] sm:$0x3] %vm363_vm3, %v361_v52  ;;  %1207 = vmatmul.msk.f32.vlgmr.msra.gmra.mxu3 %vm286_vm4, %v361_v52  ;;  %1208 = vmatmul.msk.f32.vlgmr.msra.gmra.mxu0 %vm286_vm4, %v361_v52 }
 0x22d   :  { %730 = vmatpush.msra.mxu3 %v1542_v15  ;;  %750 = vmatpush.msra.mxu0 %v1534_v12 }
 0x22f   :  { %731 = vmatpush.msra.mxu3 %v1546_v16  ;;  %751 = vmatpush.msra.mxu0 %v1538_v13 }
 0x231   :  { %732 = vmatpush.msra.mxu3 %v1559_v19  ;;  %752 = vmatpush.msra.mxu0 %v1540_v14 }
 0x233   :  { %733 = vmatpush.msra.mxu3 %v1566_v21  ;;  %753 = vmatpush.msra.mxu0 %v1548_v17 }
 0x235   :  { %734 = vmatpush.msra.mxu3 %v1570_v23  ;;  %754 = vmatpush.msra.mxu0 %v1557_v18 }
 0x237   :  { %735 = vmatpush.msra.mxu3 %v1578_v25  ;;  %755 = vmatpush.msra.mxu0 %v1561_v20 }
 0x239   :  { %736 = vmatpush.msra.mxu3 %v1588_v26  ;;  %756 = vmatpush.msra.mxu0 %v1568_v22 }
 0x23b   :  { %737 = vmatpush.msra.mxu3 %v1590_v27  ;;  %757 = vmatpush.msra.mxu0 %v1576_v24 }
 0x2a9   :  { %v415_v53 = vpop.f32.mrf.mxu0 }
 0x2aa   :  { %v421_v54 = vrot.slane %v415_v53, 6 }
 0x2ac   :  { %v425_v55 = vadd.f32 %v421_v54, %v1667_v61 }
 0x2ae   :  { %v427_v56 = vmul.f32 %v425_v55, %v1684_v31 }
 0x2af   :  { %v395_v58 = vpop.f32.mrf.mxu3 }
 0x2b0   :  { %v420_v60 = vrot.slane %v395_v58, 6  ;;  %1246 = vtanh.f32 %v427_v56 }
 0x2b2   :  { %v424_v62 = vadd.f32 %v420_v60, %v1680_v29 }
 0x2b4   :  { %v426_v63 = vmul.f32 %v424_v62, %v1678_v28 }
 0x2b6   :  { %1248 = vtanh.f32 %v426_v63  ;;  %v1247_v0 = vpop.eup %1246 }
 0x2b7   :  { %v431_v1 = vmul.f32 %v1247_v0, %v1684_v31 }
 0x2b9   :  { %v433_v8 = vadd.f32 %v431_v1, %v1695_v40 }
 0x2bc   :  { %v1249_v2 = vpop.eup %1248 }
 0x2bd   :  { %v430_v3 = vmul.f32 %v1249_v2, %v1678_v28 }
 0x2bf   :  { %v432_v7 = vadd.f32 %v430_v3, %v1693_v39 }
 0x2c1   :  { %v438_v9 = vmul.f32 %v433_v8, %v432_v7  ;;  %v437_v10 = vmul.f32 %v435_v5, %v432_v7 }
 0x2c3   :  { %440 = vrot.lane.b32.xlu1 %v438_v9, %s1416_s20 }
 0x335   :  { %v441_v32 = vpop.permute.xlu1 %440 }
 0x336   :  { %v443_v33 = vadd.f32 %v441_v32, %v437_v10 }
 0x338   :  { %1250 = vtanh.f32 %v443_v33  ;;  %v520_v50 = vrot.slane %v443_v33, 6 }
 0x33e   :  { %v1251_v34 = vpop.eup %1250 }
 0x33f   :  { %v1734_v35 = vmul.f32 %v1251_v34, %v433_v8 }
 0x341   :  { %v458_v36 = vrot.slane %v1734_v35, 2 }
 0x343   :  { %459 = vrot.lane.b32.xlu1 %v458_v36, %s1416_s20 }
 0x3b5   :  { %v460_v37 = vpop.permute.xlu1 %459 }
 0x3b6   :  { %1209 = vmatmul.msk.f32.vlgmr.msra.gmra.mxu1 %vm286_vm4, %v460_v37  ;;  %1210 = vmatmul.msk.f32.vlgmr.msra.gmra.mxu2 %vm286_vm4, %v460_v37 }
 0x3b7   :  { %814 = vmatpush.msra.mxu1 %v1542_v15  ;;  %834 = vmatpush.msra.mxu2 %v1534_v12 }
 0x3b9   :  { %815 = vmatpush.msra.mxu1 %v1546_v16  ;;  %835 = vmatpush.msra.mxu2 %v1538_v13 }
 0x3bb   :  { %816 = vmatpush.msra.mxu1 %v1559_v19  ;;  %836 = vmatpush.msra.mxu2 %v1540_v14 }
 0x3bd   :  { %817 = vmatpush.msra.mxu1 %v1566_v21  ;;  %837 = vmatpush.msra.mxu2 %v1548_v17 }
 0x3bf   :  { %818 = vmatpush.msra.mxu1 %v1570_v23  ;;  %838 = vmatpush.msra.mxu2 %v1557_v18 }
 0x3c1   :  { %819 = vmatpush.msra.mxu1 %v1578_v25  ;;  %839 = vmatpush.msra.mxu2 %v1561_v20 }
 0x3c3   :  { %820 = vmatpush.msra.mxu1 %v1588_v26  ;;  %840 = vmatpush.msra.mxu2 %v1568_v22 }
 0x3c5   :  { %821 = vmatpush.msra.mxu1 %v1590_v27  ;;  %841 = vmatpush.msra.mxu2 %v1576_v24 }
 0x433   :  { %v480_v38 = vpop.f32.mrf.mxu1 }
 0x434   :  { %v505_v41 = vrot.slane %v480_v38, 4 }
 0x436   :  { %v509_v42 = vadd.f32 %v505_v41, %v1676_v11 }
 0x438   :  { %v511_v43 = vmul.f32 %v509_v42, %v1678_v28 }
 0x439   :  { %v500_v44 = vpop.f32.mrf.mxu2 }
 0x43a   :  { %1252 = vtanh.f32 %v511_v43  ;;  %v506_v45 = vrot.slane %v500_v44, 4 }
 0x43c   :  { %v510_v46 = vadd.f32 %v506_v45, %v1682_v30 }
 0x43e   :  { %v512_v47 = vmul.f32 %v510_v46, %v1684_v31 }
 0x440   :  { %v1253_v48 = vpop.eup %1252  ;;  %1254 = vtanh.f32 %v512_v47 }
 0x441   :  { %v515_v49 = vmul.f32 %v1253_v48, %v1678_v28 }
 0x443   :  { %v517_v52 = vadd.f32 %v515_v49, %v1693_v39 }
 0x445   :  { %v522_v53 = vmul.f32 %v520_v50, %v517_v52 }
 0x446   :  { %v1255_v54 = vpop.eup %1254 }
 0x447   :  { %v516_v11 = vmul.f32 %v1255_v54, %v1684_v31 }
 0x449   :  { %v518_v55 = vadd.f32 %v516_v11, %v1695_v40 }
 0x44b   :  { %v523_v56 = vmul.f32 %v518_v55, %v517_v52 }
 0x44d   :  { %525 = vrot.lane.b32.xlu2 %v523_v56, %s1416_s20 }
 0x4a7   :  { %v526_v58 = vpop.permute.xlu2 %525 }
 0x4a8   :  { %v528_v30 = vadd.f32 %v526_v58, %v522_v53 }
 0x4aa   :  { %1256 = vtanh.f32 %v528_v30 }
 0x4b0   :  { %v1257_v60 = vpop.eup %1256 }
 0x4b1   :  { %v1765_v62 = vmul.f32 %v1257_v60, %v518_v55 }
 0x4b3   :  { %v543_v63 = vrot.slane %v1765_v62, 4 }
 0x4b5   :  { %544 = vrot.lane.b32.xlu2 %v543_v63, %s1416_s20 }
 0x50f   :  { %v545_v0 = vpop.permute.xlu2 %544 }
 0x510   :  { %1211 = vmatmul.msk.f32.vlgmr.msrb.gmra.mxu3 %vm286_vm4, %v545_v0  ;;  %1212 = vmatmul.msk.f32.vlgmr.msrb.gmra.mxu0 %vm286_vm4, %v545_v0 }
 0x511   :  { %898 = vmatpush.msrb.mxu3 %v1542_v15  ;;  %918 = vmatpush.msrb.mxu0 %v1534_v12 }
 0x513   :  { %899 = vmatpush.msrb.mxu3 %v1546_v16  ;;  %919 = vmatpush.msrb.mxu0 %v1538_v13 }
 0x515   :  { %900 = vmatpush.msrb.mxu3 %v1559_v19  ;;  %920 = vmatpush.msrb.mxu0 %v1540_v14 }
 0x517   :  { %901 = vmatpush.msrb.mxu3 %v1566_v21  ;;  %921 = vmatpush.msrb.mxu0 %v1548_v17 }
 0x519   :  { %902 = vmatpush.msrb.mxu3 %v1570_v23  ;;  %922 = vmatpush.msrb.mxu0 %v1557_v18 }
 0x51b   :  { %903 = vmatpush.msrb.mxu3 %v1578_v25  ;;  %923 = vmatpush.msrb.mxu0 %v1561_v20 }
 0x51d   :  { %904 = vmatpush.msrb.mxu3 %v1588_v26  ;;  %924 = vmatpush.msrb.mxu0 %v1568_v22 }
 0x51f   :  { %905 = vmatpush.msrb.mxu3 %v1590_v27  ;;  %925 = vmatpush.msrb.mxu0 %v1576_v24  ;;  %v605_v24 = vrot.slane %v528_v30, 6 }
 0x58d   :  { %v585_v12 = vpop.f32.mrf.mxu0 }
 0x58e   :  { %v591_v13 = vrot.slane %v585_v12, 2 }
 0x590   :  { %v595_v14 = vadd.f32 %v591_v13, %v1667_v61 }
 0x592   :  { %v597_v15 = vmul.f32 %v595_v14, %v1684_v31 }
 0x593   :  { %v565_v16 = vpop.f32.mrf.mxu3 }
 0x594   :  { %v590_v17 = vrot.slane %v565_v16, 2  ;;  %1258 = vtanh.f32 %v597_v15 }
 0x596   :  { %v594_v18 = vadd.f32 %v590_v17, %v1680_v29 }
 0x598   :  { %v596_v19 = vmul.f32 %v594_v18, %v1678_v28 }
 0x59a   :  { %1260 = vtanh.f32 %v596_v19  ;;  %v1259_v20 = vpop.eup %1258 }
 0x59b   :  { %v601_v21 = vmul.f32 %v1259_v20, %v1684_v31 }
 0x59d   :  { %v603_v26 = vadd.f32 %v601_v21, %v1695_v40 }
 0x5a0   :  { %v1261_v22 = vpop.eup %1260 }
 0x5a1   :  { %v600_v23 = vmul.f32 %v1261_v22, %v1678_v28 }
 0x5a3   :  { %v602_v25 = vadd.f32 %v600_v23, %v1693_v39 }
 0x5a5   :  { %v608_v27 = vmul.f32 %v603_v26, %v602_v25  ;;  %v607_v61 = vmul.f32 %v605_v24, %v602_v25 }
 0x5a7   :  { %610 = vrot.lane.b32.xlu0 %v608_v27, %s1416_s20 }
 0x619   :  { %v611_v1 = vpop.permute.xlu0 %610 }
 0x61a   :  { %v613_v29 = vadd.f32 %v611_v1, %v607_v61 }
 0x61c   :  { %1262 = vtanh.f32 %v613_v29  ;;  %v692_v38 = vrot.slane %v613_v29, 6 }
 0x622   :  { %v1263_v2 = vpop.eup %1262 }
 0x623   :  { %v1796_v3 = vmul.f32 %v1263_v2, %v603_v26 }
 0x625   :  { %v636_v5 = vrot.slane %v1796_v3, 6 }
 0x627   :  { %637 = vrot.lane.b32.xlu1 %v636_v5, %s1416_s20 }
 0x699   :  { %v638_v7 = vpop.permute.xlu1 %637 }
 0x69a   :  { %1213 = vmatmul.msk.f32.vlgmr.msrb.gmra.mxu1 %vm286_vm4, %v638_v7  ;;  %1214 = vmatmul.msk.f32.vlgmr.msrb.gmra.mxu2 %vm286_vm4, %v638_v7 }
 0x717   :  { %v658_v8 = vpop.f32.mrf.mxu1 }
 0x718   :  { %v681_v9 = vadd.f32 %v658_v8, %v1665_v59 }
 0x71a   :  { %v683_v10 = vmul.f32 %v681_v9, %v1678_v28 }
 0x71c   :  { %1264 = vtanh.f32 %v683_v10 }
 0x71d   :  { %v678_v32 = vpop.f32.mrf.mxu2 }
 0x71e   :  { %v682_v33 = vadd.f32 %v678_v32, %v1674_v6 }
 0x720   :  { %v684_v34 = vmul.f32 %v682_v33, %v1684_v31 }
 0x722   :  { %v1265_v36 = vpop.eup %1264  ;;  %1266 = vtanh.f32 %v684_v34 }
 0x723   :  { %v687_v37 = vmul.f32 %v1265_v36, %v1678_v28 }
 0x725   :  { %v689_v41 = vadd.f32 %v687_v37, %v1693_v39 }
 0x727   :  { %v694_v42 = vmul.f32 %v692_v38, %v689_v41 }
 0x728   :  { %v1267_v43 = vpop.eup %1266 }
 0x729   :  { %v688_v44 = vmul.f32 %v1267_v43, %v1684_v31 }
 0x72b   :  { %v690_v45 = vadd.f32 %v688_v44, %v1695_v40 }
 0x72d   :  { %v695_v46 = vmul.f32 %v690_v45, %v689_v41 }
 0x72f   :  { %697 = vrot.lane.b32.xlu2 %v695_v46, %s1416_s20 }
 0x789   :  { %v698_v47 = vpop.permute.xlu2 %697 }
 0x78a   :  { %v700_v48 = vadd.f32 %v698_v47, %v694_v42 }
 0x78c   :  { %1268 = vtanh.f32 %v700_v48  ;;  %v779_v14 = vrot.slane %v700_v48, 6 }
 0x792   :  { %v1269_v49 = vpop.eup %1268 }
 0x793   :  { %v1811_v50 = vmul.f32 %v1269_v49, %v690_v45 }
 0x795   :  { %704 = vrot.lane.b32.xlu0 %v1811_v50, %s1416_s20 }
 0x807   :  { %v705_v52 = vpop.permute.xlu0 %704 }
 0x808   :  { %708 = vst.msk [vmem:[#allocation2 + $0x8] sm:$0x3] %vm363_vm3, %v705_v52  ;;  %1215 = vmatmul.msk.f32.vlgmr.msra.gmra.mxu3 %vm286_vm4, %v705_v52  ;;  %1216 = vmatmul.msk.f32.vlgmr.msra.gmra.mxu0 %vm286_vm4, %v705_v52 }
 0x885   :  { %v759_v53 = vpop.f32.mrf.mxu0 }
 0x886   :  { %v765_v54 = vrot.slane %v759_v53, 6 }
 0x888   :  { %v769_v11 = vadd.f32 %v765_v54, %v1669_v4 }
 0x88a   :  { %v771_v55 = vmul.f32 %v769_v11, %v1684_v31 }
 0x88b   :  { %v739_v56 = vpop.f32.mrf.mxu3 }
 0x88c   :  { %v764_v58 = vrot.slane %v739_v56, 6  ;;  %1270 = vtanh.f32 %v771_v55 }
 0x88e   :  { %v768_v30 = vadd.f32 %v764_v58, %v1663_v57 }
 0x890   :  { %v770_v60 = vmul.f32 %v768_v30, %v1678_v28 }
 0x892   :  { %1272 = vtanh.f32 %v770_v60  ;;  %v1271_v63 = vpop.eup %1270 }
 0x893   :  { %v775_v0 = vmul.f32 %v1271_v63, %v1684_v31 }
 0x895   :  { %v777_v16 = vadd.f32 %v775_v0, %v1695_v40 }
 0x898   :  { %v1273_v12 = vpop.eup %1272 }
 0x899   :  { %v774_v13 = vmul.f32 %v1273_v12, %v1678_v28 }
 0x89b   :  { %v776_v15 = vadd.f32 %v774_v13, %v1693_v39 }
 0x89d   :  { %v782_v17 = vmul.f32 %v777_v16, %v776_v15  ;;  %v781_v18 = vmul.f32 %v779_v14, %v776_v15 }
 0x89f   :  { %784 = vrot.lane.b32.xlu1 %v782_v17, %s1416_s20  ;;  %v1238_v17 = vld [vmem:[%s2011_s11] ss:$0 sm:$0xff] }
 0x911   :  { %v785_v19 = vpop.permute.xlu1 %784 }
 0x912   :  { %v787_v20 = vadd.f32 %v785_v19, %v781_v18 }
 0x914   :  { %1274 = vtanh.f32 %v787_v20  ;;  %v863_v9 = vrot.slane %v787_v20, 6 }
 0x91a   :  { %v1275_v21 = vpop.eup %1274 }
 0x91b   :  { %v1827_v22 = vmul.f32 %v1275_v21, %v777_v16  ;;  %v1237_v16 = vld [vmem:[%s2010_s10] ss:$0 sm:$0xff] }
 0x91d   :  { %v801_v23 = vrot.slane %v1827_v22, 2 }
 0x91f   :  { %802 = vrot.lane.b32.xlu2 %v801_v23, %s1416_s20 }
 0x979   :  { %v803_v24 = vpop.permute.xlu2 %802 }
 0x97a   :  { %1217 = vmatmul.msk.f32.vlgmr.msra.gmra.mxu1 %vm286_vm4, %v803_v24  ;;  %1218 = vmatmul.msk.f32.vlgmr.msra.gmra.mxu2 %vm286_vm4, %v803_v24  ;;  %v1903_v24 = vld [vmem:[#allocation2 + $0x8] sm:$0x3] }
 0x9f7   :  { %v823_v25 = vpop.f32.mrf.mxu1 }
 0x9f8   :  { %v848_v26 = vrot.slane %v823_v25, 4 }
 0x9fa   :  { %v852_v27 = vadd.f32 %v848_v26, %v1665_v59 }
 0x9fc   :  { %v854_v61 = vmul.f32 %v852_v27, %v1678_v28  ;;  %v992_v27 = vmul.f32 %v1237_v16, %v1903_v24 }
 0x9fd   :  { %v843_v1 = vpop.f32.mrf.mxu2 }
 0x9fe   :  { %1276 = vtanh.f32 %v854_v61  ;;  %v849_v29 = vrot.slane %v843_v1, 4 }
 0xa00   :  { %v853_v2 = vadd.f32 %v849_v29, %v1674_v6 }
 0xa02   :  { %v855_v5 = vmul.f32 %v853_v2, %v1684_v31 }
 0xa04   :  { %v1277_v7 = vpop.eup %1276  ;;  %1278 = vtanh.f32 %v855_v5 }
 0xa05   :  { %v858_v8 = vmul.f32 %v1277_v7, %v1678_v28 }
 0xa07   :  { %v860_v10 = vadd.f32 %v858_v8, %v1693_v39 }
 0xa09   :  { %v865_v32 = vmul.f32 %v863_v9, %v860_v10 }
 0xa0a   :  { %v1279_v33 = vpop.eup %1278 }
 0xa0b   :  { %v859_v59 = vmul.f32 %v1279_v33, %v1684_v31 }
 0xa0d   :  { %v861_v34 = vadd.f32 %v859_v59, %v1695_v40 }
 0xa0f   :  { %v866_v36 = vmul.f32 %v861_v34, %v860_v10 }
 0xa11   :  { %868 = vrot.lane.b32.xlu0 %v866_v36, %s1416_s20 }
 0xa19   :  { %365 = vrot.lane.b32.xlu0 %v1702_v51, %s1417_s9 }
 0xa21   :  { %532 = vrot.lane.b32.xlu0 %v1765_v62, %s1416_s20 }
 0xa29   :  { %623 = vrot.lane.b32.xlu0 %v1796_v3, %s1417_s9 }
 0xa31   :  { %796 = vrot.lane.b32.xlu0 %v1827_v22, %s1417_s9 }
 0xa83   :  { %v869_v6 = vpop.permute.xlu0 %868 }
 0xa84   :  { %v871_v37 = vadd.f32 %v869_v6, %v865_v32 }
 0xa86   :  { %1280 = vtanh.f32 %v871_v37  ;;  %v947_v12 = vrot.slane %v871_v37, 6 }
 0xa8b   :  { %v366_v38 = vpop.permute.xlu0 %365 }
 0xa8c   :  { %v1281_v41 = vpop.eup %1280  ;;  %369 = vst.msk [vmem:[#allocation3 + $0xe] sm:$0x3] %vm363_vm3, %v366_v38 }
 0xa8d   :  { %v873_v42 = vmul.f32 %v1281_v41, %v861_v34 }
 0xa8f   :  { %v885_v43 = vrot.slane %v873_v42, 4 }
 0xa91   :  { %886 = vrot.lane.b32.xlu1 %v885_v43, %s1416_s20 }
 0xa93   :  { %v533_v51 = vpop.permute.xlu0 %532 }
 0xa94   :  { %537 = vst.msk [vmem:[#allocation2] sm:$0x30] %vm536_vm5, %v533_v51 }
 0xa99   :  { %447 = vrot.lane.b32.xlu1 %v1734_v35, %s1416_s20 }
 0xa9b   :  { %v624_v44 = vpop.permute.xlu0 %623  ;;  %v1914_v7 = vld [vmem:[#allocation2 + $0x4] sm:$0x3] }
 0xa9c   :  { %627 = vst.msk [vmem:[#allocation3 + $0x2] sm:$0xc0] %vm621_vm6, %v624_v44  ;;  %v990_v32 = vmul.f32 %v1237_v16, %v1914_v7 }
 0xaa1   :  { %538 = vrot.lane.b32.xlu1 %v1765_v62, %s1417_s9 }
 0xaa3   :  { %v797_v45 = vpop.permute.xlu0 %796 }
 0xaa4   :  { %800 = vst.msk [vmem:[#allocation3 + $0x2] sm:$0xc] %vm451_vm7, %v797_v45 }
 0xaa9   :  { %709 = vrot.lane.b32.xlu1 %v1811_v50, %s1417_s9 }
 0xaab   :  { %v1910_v2 = vld [vmem:[#allocation3 + $0x4] sm:$0x3] }
 0xaac   :  { %v1002_v9 = vmul.f32 %v1238_v17, %v1910_v2 }
 0xaae   :  { %v1010_v59 = vadd.f32 %v1002_v9, %v990_v32  ;;  %v1124_v9 = vld [vmem:[%s2013_s13 + $0x18] sm:$0xff] }
 0xaaf   :  { %1141 = vmatpush.msrb.mxu1 %v1124_v9 }
 0xab0   :  { %v1022_v41 = vsel %vm363_vm3, %v1010_v59, 0.0 }
 0xab1   :  { %875 = vrot.lane.b32.xlu1 %v873_v42, %s1416_s20 }
 0xb03   :  { %v887_v46 = vpop.permute.xlu1 %886 }
 0xb04   :  { %1219 = vmatmul.msk.f32.vlgmr.msrb.gmra.mxu3 %vm286_vm4, %v887_v46  ;;  %1220 = vmatmul.msk.f32.vlgmr.msrb.gmra.mxu0 %vm286_vm4, %v887_v46 }
 0xb0b   :  { %v448_v47 = vpop.permute.xlu1 %447 }
 0xb0c   :  { %452 = vst.msk [vmem:[#allocation2] sm:$0xc] %vm451_vm7, %v448_v47 }
 0xb13   :  { %v539_v48 = vpop.permute.xlu1 %538  ;;  %v1916_v8 = vld [vmem:[#allocation2 + $0x2] sm:$0x3] }
 0xb14   :  { %542 = vst.msk [vmem:[#allocation3 + $0x6] sm:$0x30] %vm536_vm5, %v539_v48  ;;  %v989_v33 = vmul.f32 %v1237_v16, %v1916_v8 }
 0xb1b   :  { %v710_v62 = vpop.permute.xlu1 %709  ;;  %v1926_v37 = vld [vmem:[#allocation3 + $0xa] sm:$0x3] }
 0xb1c   :  { %713 = vst.msk [vmem:[#allocation3 + $0x6] sm:$0x3] %vm363_vm3, %v710_v62  ;;  %v1005_v44 = vmul.f32 %v1238_v17, %v1926_v37 }
 0xb23   :  { %v876_v49 = vpop.permute.xlu1 %875 }
 0xb24   :  { %879 = vst.msk [vmem:[#allocation2 + $0x8] sm:$0x30] %vm536_vm5, %v876_v49 }
 0xb2b   :  { %v1928_v38 = vld [vmem:[#allocation2 + $0xc] sm:$0x3] }
 0xb2c   :  { %v994_v45 = vmul.f32 %v1237_v16, %v1928_v38 }
 0xb81   :  { %v927_v50 = vpop.f32.mrf.mxu0 }
 0xb82   :  { %v933_v52 = vrot.slane %v927_v50, 2 }
 0xb84   :  { %v937_v53 = vadd.f32 %v933_v52, %v1669_v4  ;;  %v1940_v52 = vld [vmem:[#allocation2] sm:$0x3] }
 0xb86   :  { %v939_v54 = vmul.f32 %v937_v53, %v1684_v31 }
 0xb87   :  { %v907_v11 = vpop.f32.mrf.mxu3 }
 0xb88   :  { %v932_v55 = vrot.slane %v907_v11, 2  ;;  %1282 = vtanh.f32 %v939_v54  ;;  %v988_v54 = vmul.f32 %v1237_v16, %v1940_v52 }
 0xb8a   :  { %v936_v56 = vadd.f32 %v932_v55, %v1663_v57 }
 0xb8c   :  { %v938_v58 = vmul.f32 %v936_v56, %v1678_v28 }
 0xb8e   :  { %1284 = vtanh.f32 %v938_v58  ;;  %v1283_v30 = vpop.eup %1282  ;;  %v1948_v58 = vld [vmem:[#allocation3 + $0xe] sm:$0x3] }
 0xb8f   :  { %v943_v60 = vmul.f32 %v1283_v30, %v1684_v31 }
 0xb91   :  { %v945_v4 = vadd.f32 %v943_v60, %v1695_v40 }
 0xb94   :  { %v1285_v63 = vpop.eup %1284 }
 0xb95   :  { %v942_v0 = vmul.f32 %v1285_v63, %v1678_v28  ;;  %v1007_v63 = vmul.f32 %v1238_v17, %v1948_v58 }
 0xb97   :  { %v944_v13 = vadd.f32 %v942_v0, %v1693_v39 }
 0xb99   :  { %v950_v14 = vmul.f32 %v945_v4, %v944_v13  ;;  %v949_v15 = vmul.f32 %v947_v12, %v944_v13 }
 0xb9b   :  { %952 = vrot.lane.b32.xlu2 %v950_v14, %s1416_s20 }
 0xba3   :  { %453 = vrot.lane.b32.xlu2 %v1734_v35, %s1417_s9 }
 0xbab   :  { %617 = vrot.lane.b32.xlu2 %v1796_v3, %s1416_s20  ;;  %v1888_v3 = vld [vmem:[#allocation3 + $0x6] sm:$0x3] }
 0xbac   :  { %v1003_v21 = vmul.f32 %v1238_v17, %v1888_v3 }
 0xbb3   :  { %791 = vrot.lane.b32.xlu2 %v1827_v22, %s1416_s20  ;;  %v1901_v22 = vld [vmem:[#allocation3 + $0x8] sm:$0x3] }
 0xbb4   :  { %v1004_v26 = vmul.f32 %v1238_v17, %v1901_v22 }
 0xbb6   :  { %v1012_v1 = vadd.f32 %v1004_v26, %v992_v27 }
 0xbb8   :  { %v1028_v29 = vsel %vm363_vm3, %v1012_v1, 0.0 }
 0xbbb   :  { %880 = vrot.lane.b32.xlu2 %v873_v42, %s1417_s9 }
 0xbf5   :  { %v953_v57 = vpop.permute.xlu2 %952 }
 0xbf6   :  { %v955_v28 = vadd.f32 %v953_v57, %v949_v15 }
 0xbf8   :  { %1286 = vtanh.f32 %v955_v28 }
 0xbfd   :  { %v454_v31 = vpop.permute.xlu2 %453 }
 0xbfe   :  { %v1287_v39 = vpop.eup %1286  ;;  %457 = vst.msk [vmem:[#allocation3 + $0xa] sm:$0xc] %vm451_vm7, %v454_v31 }
 0xbff   :  { %v957_v40 = vmul.f32 %v1287_v39, %v945_v4 }
 0xc01   :  { %964 = vrot.lane.b32.xlu1 %v957_v40, %s1417_s9  ;;  %959 = vrot.lane.b32.xlu0 %v957_v40, %s1416_s20 }
 0xc05   :  { %v618_v35 = vpop.permute.xlu2 %617  ;;  %v1924_v6 = vld [vmem:[#allocation3 + $0xc] sm:$0x3] }
 0xc06   :  { %622 = vst.msk [vmem:[#allocation2] sm:$0xc0] %vm621_vm6, %v618_v35  ;;  %v1006_v51 = vmul.f32 %v1238_v17, %v1924_v6 }
 0xc08   :  { %v1014_v47 = vadd.f32 %v1006_v51, %v994_v45  ;;  %v1123_v51 = vld [vmem:[%s2013_s13 + $0x10] sm:$0xff]  ;;  %v1118_v45 = vld [vmem:[%s2012_s12 + $0x8] sm:$0xff] }
 0xc09   :  { %1142 = vmatpush.msrb.mxu1 %v1123_v51 }
 0xc0a   :  { %v1034_v62 = vsel %vm363_vm3, %v1014_v47, 0.0 }
 0xc0d   :  { %v792_v18 = vpop.permute.xlu2 %791  ;;  %v1896_v19 = vld [vmem:[#allocation2 + $0x6] sm:$0x3] }
 0xc0e   :  { %795 = vst.msk [vmem:[#allocation2 + $0x8] sm:$0xc] %vm451_vm7, %v792_v18  ;;  %v991_v20 = vmul.f32 %v1237_v16, %v1896_v19 }
 0xc10   :  { %v1011_v23 = vadd.f32 %v1003_v21, %v991_v20 }
 0xc12   :  { %v1025_v25 = vsel %vm363_vm3, %v1011_v23, 0.0 }
 0xc13   :  { %1026 = vadd.xlane.f32.xlu2 %v1025_v25 }
 0xc15   :  { %v881_v61 = vpop.permute.xlu2 %880  ;;  %v1922_v36 = vld [vmem:[#allocation2 + $0xa] sm:$0x3] }
 0xc16   :  { %884 = vst.msk [vmem:[#allocation3 - $0x2] sm:$0x30] %vm536_vm5, %v881_v61  ;;  %v993_v43 = vmul.f32 %v1237_v16, %v1922_v36 }
 0xc18   :  { %v1013_v46 = vadd.f32 %v1005_v44, %v993_v43  ;;  %v1119_v43 = vld [vmem:[%s2012_s12 + $0x10] sm:$0xff] }
 0xc1a   :  { %v1031_v48 = vsel %vm363_vm3, %v1013_v46, 0.0  ;;  %v1122_v46 = vld [vmem:[%s2013_s13 + $0x8] sm:$0xff] }
 0xc1b   :  { %1029 = vadd.xlane.f32.xlu2 %v1028_v29  ;;  %v1120_v29 = vld [vmem:[%s2012_s12 + $0x18] sm:$0xff]  ;;  %1143 = vmatpush.msrb.mxu1 %v1122_v46 }
 0xc1c   :  { %1164 = vmatpush.msrb.mxu2 %v1120_v29 }
 0xc1d   :  { %v1912_v5 = vld [vmem:[#allocation3 + $0x2] sm:$0x3] }
 0xc1e   :  { %v1001_v10 = vmul.f32 %v1238_v17, %v1912_v5  ;;  %1165 = vmatpush.msrb.mxu2 %v1119_v43 }
 0xc20   :  { %v1009_v34 = vadd.f32 %v1001_v10, %v989_v33  ;;  %1166 = vmatpush.msrb.mxu2 %v1118_v45 }
 0xc22   :  { %v1019_v42 = vsel %vm363_vm3, %v1009_v34, 0.0 }
 0xc2b   :  { %1023 = vadd.xlane.f32.xlu1 %v1022_v41  ;;  %1020 = vadd.xlane.f32.xlu0 %v1019_v42 }
 0xc33   :  { %1032 = vadd.xlane.f32.xlu0 %v1031_v48  ;;  %1035 = vadd.xlane.f32.xlu1 %v1034_v62  ;;  %v1117_v48 = vld [vmem:[%s2012_s12] sm:$0xff] }
 0xc34   :  { %v1121_v62 = vld [vmem:[%s2013_s13] sm:$0xff]  ;;  %1167 = vmatpush.msrb.mxu2 %v1117_v48 }
 0xc35   :  { %1144 = vmatpush.msrb.mxu1 %v1121_v62 }
 0xc73   :  { %v960_v49 = vpop.permute.xlu0 %959  ;;  %v965_v50 = vpop.permute.xlu1 %964 }
 0xc74   :  { %963 = vst.msk [vmem:[#allocation2 + $0x8] sm:$0xc0] %vm621_vm6, %v960_v49 }
 0xc75   :  { %967 = vst.msk [vmem:[#allocation3 - $0x6] sm:$0xc0] %vm621_vm6, %v965_v50 }
 0xc7b   :  { %v1946_v55 = vld [vmem:[#allocation2 + $0xe] sm:$0x3] }
 0xc7c   :  { %v1942_v53 = vld [vmem:[#allocation3] sm:$0x3]  ;;  %v995_v60 = vmul.f32 %v1237_v16, %v1946_v55 }
 0xc7d   :  { %v1000_v11 = vmul.f32 %v1238_v17, %v1942_v53 }
 0xc7e   :  { %v1015_v0 = vadd.f32 %v1007_v63, %v995_v60 }
 0xc7f   :  { %v1008_v56 = vadd.f32 %v1000_v11, %v988_v54 }
 0xc80   :  { %v1037_v12 = vsel %vm363_vm3, %v1015_v0, 0.0 }
 0xc81   :  { %v1016_v30 = vsel %vm363_vm3, %v1008_v56, 0.0 }
 0xc82   :  { %1017 = vadd.xlane.f32.xlu2 %v1016_v30 }
 0xc86   :  { %v1027_v13 = vpop.xlane.xlu2 %1026 }
 0xc8a   :  { %1038 = vadd.xlane.f32.xlu2 %v1037_v12 }
 0xc8e   :  { %v1030_v4 = vpop.xlane.xlu2 %1029 }
 0xc9e   :  { %v1021_v14 = vpop.xlane.xlu0 %1020  ;;  %v1024_v15 = vpop.xlane.xlu1 %1023 }
 0xc9f   :  { %v1041_v35 = vmax.f32 %v1024_v15, %v1027_v13 }
 0xca6   :  { %v1033_v28 = vpop.xlane.xlu0 %1032  ;;  %v1036_v39 = vpop.xlane.xlu1 %1035 }
 0xca7   :  { %v1042_v18 = vmax.f32 %v1030_v4, %v1033_v28 }
 0xcf5   :  { %v1018_v57 = vpop.xlane.xlu2 %1017 }
 0xcf6   :  { %v1040_v31 = vmax.f32 %v1018_v57, %v1021_v14 }
 0xcf8   :  { %v1044_v16 = vmax.f32 %v1040_v31, %v1041_v35 }
 0xcfd   :  { %v1039_v40 = vpop.xlane.xlu2 %1038 }
 0xcfe   :  { %v1043_v20 = vmax.f32 %v1036_v39, %v1039_v40 }
 0xd00   :  { %v1045_v21 = vmax.f32 %v1042_v18, %v1043_v20 }
 0xd02   :  { %v1046_v23 = vmax.f32 %v1044_v16, %v1045_v21 }
 0xd04   :  { %v1047_v17 = vsub.f32 %v1018_v57, %v1046_v23  ;;  %v1050_v25 = vsub.f32 %v1021_v14, %v1046_v23  ;;  %v1053_v26 = vsub.f32 %v1024_v15, %v1046_v23  ;;  %v1056_v27 = vsub.f32 %v1027_v13, %v1046_v23 }
 0xd05   :  { %v1059_v61 = vsub.f32 %v1030_v4, %v1046_v23  ;;  %v1062_v1 = vsub.f32 %v1033_v28, %v1046_v23  ;;  %v1065_v59 = vsub.f32 %v1036_v39, %v1046_v23  ;;  %v1068_v41 = vsub.f32 %v1039_v40, %v1046_v23 }
 0xd06   :  { %v1048_v10 = vmul.f32 1.442695, %v1047_v17  ;;  %v1051_v32 = vmul.f32 1.442695, %v1050_v25  ;;  %v1054_v33 = vmul.f32 1.442695, %v1053_v26 }
 0xd07   :  { %v1057_v34 = vmul.f32 1.442695, %v1056_v27  ;;  %v1060_v42 = vmul.f32 1.442695, %v1059_v61  ;;  %v1063_v44 = vmul.f32 1.442695, %v1062_v1 }
 0xd08   :  { %1288 = vpow2.f32 %v1048_v10  ;;  %v1066_v47 = vmul.f32 1.442695, %v1065_v59  ;;  %v1069_v49 = vmul.f32 1.442695, %v1068_v41 }
 0xd09   :  { %1290 = vpow2.f32 %v1051_v32 }
 0xd0a   :  { %1292 = vpow2.f32 %v1054_v33 }
 0xd0b   :  { %1294 = vpow2.f32 %v1057_v34 }
 0xd0c   :  { %1296 = vpow2.f32 %v1060_v42 }
 0xd0d   :  { %1298 = vpow2.f32 %v1063_v44 }
 0xd0e   :  { %v1289_v50 = vpop.eup %1288  ;;  %1300 = vpow2.f32 %v1066_v47 }
 0xd0f   :  { %v1291_v54 = vpop.eup %1290  ;;  %1302 = vpow2.f32 %v1069_v49 }
 0xd10   :  { %v1293_v11 = vpop.eup %1292  ;;  %v1071_v60 = vadd.f32 %v1291_v54, %v1289_v50 }
 0xd11   :  { %v1295_v56 = vpop.eup %1294 }
 0xd12   :  { %v1297_v30 = vpop.eup %1296  ;;  %v1072_v63 = vadd.f32 %v1295_v56, %v1293_v11 }
 0xd13   :  { %v1299_v0 = vpop.eup %1298 }
 0xd14   :  { %v1301_v12 = vpop.eup %1300  ;;  %v1073_v13 = vadd.f32 %v1299_v0, %v1297_v30  ;;  %v1075_v15 = vadd.f32 %v1072_v63, %v1071_v60 }
 0xd15   :  { %v1303_v4 = vpop.eup %1302 }
 0xd16   :  { %v1074_v14 = vadd.f32 %v1303_v4, %v1301_v12 }
 0xd18   :  { %v1076_v57 = vadd.f32 %v1074_v14, %v1073_v13 }
 0xd1a   :  { %v1077_v28 = vadd.f32 %v1076_v57, %v1075_v15 }
 0xd1c   :  { %1304 = vrcp.f32 %v1077_v28 }
 0xd22   :  { %v1305_v31 = vpop.eup %1304 }
 0xd23   :  { %v1085_v39 = vmul.f32 %v1305_v31, %v1301_v12  ;;  %v1086_v40 = vmul.f32 %v1305_v31, %v1303_v4  ;;  %v1079_v35 = vmul.f32 %v1305_v31, %v1289_v50  ;;  %v1080_v18 = vmul.f32 %v1305_v31, %v1291_v54 }
 0xd24   :  { %v1081_v20 = vmul.f32 %v1305_v31, %v1293_v11  ;;  %v1082_v16 = vmul.f32 %v1305_v31, %v1295_v56  ;;  %v1083_v21 = vmul.f32 %v1305_v31, %v1297_v30  ;;  %v1084_v23 = vmul.f32 %v1305_v31, %v1299_v0 }
 0xd25   :  { %v1093_v17 = vmul.f32 %v1085_v39, %v1928_v38  ;;  %v1094_v25 = vmul.f32 %v1086_v40, %v1946_v55  ;;  %v1108_v26 = vmul.f32 %v1085_v39, %v1924_v6  ;;  %v1109_v27 = vmul.f32 %v1086_v40, %v1948_v58 }
 0xd26   :  { %v1102_v61 = vmul.f32 %v1079_v35, %v1942_v53  ;;  %v1103_v1 = vmul.f32 %v1080_v18, %v1912_v5  ;;  %v1104_v29 = vmul.f32 %v1081_v20, %v1910_v2  ;;  %v1105_v9 = vmul.f32 %v1082_v16, %v1888_v3 }
 0xd27   :  { %v1113_v10 = vadd.f32 %v1109_v27, %v1108_v26  ;;  %v1106_v32 = vmul.f32 %v1083_v21, %v1901_v22  ;;  %v1107_v33 = vmul.f32 %v1084_v23, %v1926_v37  ;;  %v1087_v55 = vmul.f32 %v1079_v35, %v1940_v52 }
 0xd28   :  { %v1110_v38 = vadd.f32 %v1103_v1, %v1102_v61  ;;  %v1111_v59 = vadd.f32 %v1105_v9, %v1104_v29  ;;  %v1088_v6 = vmul.f32 %v1080_v18, %v1916_v8  ;;  %v1089_v53 = vmul.f32 %v1081_v20, %v1914_v7 }
 0xd29   :  { %v1112_v58 = vadd.f32 %v1107_v33, %v1106_v32  ;;  %v1090_v5 = vmul.f32 %v1082_v16, %v1896_v19  ;;  %v1091_v2 = vmul.f32 %v1083_v21, %v1903_v24  ;;  %v1098_v34 = vadd.f32 %v1094_v25, %v1093_v17  ;;  %v1239_v19 = vld [vmem:[%s2014_s14] ss:$0 sm:$0xff] }
 0xd2a   :  { %v1114_v3 = vadd.f32 %v1111_v59, %v1110_v38  ;;  %v1092_v41 = vmul.f32 %v1084_v23, %v1922_v36  ;;  %v1095_v22 = vadd.f32 %v1088_v6, %v1087_v55 }
 0xd2b   :  { %v1115_v42 = vadd.f32 %v1113_v10, %v1112_v58  ;;  %v1096_v37 = vadd.f32 %v1090_v5, %v1089_v53 }
 0xd2c   :  { %v1097_v43 = vadd.f32 %v1092_v41, %v1091_v2 }
 0xd2d   :  { %v1116_v51 = vadd.f32 %v1115_v42, %v1114_v3  ;;  %v1099_v52 = vadd.f32 %v1096_v37, %v1095_v22 }
 0xd2e   :  { %v1100_v44 = vadd.f32 %v1098_v34, %v1097_v43 }
 0xd2f   :  { %1221 = vmatmul.msk.f32.vlgmr.msrb.gmra.mxu1 %vm1125_vm8, %v1116_v51 }
 0xd30   :  { %v1101_v8 = vadd.f32 %v1100_v44, %v1099_v52 }
 0xd32   :  { %1222 = vmatmul.msk.f32.vlgmr.msrb.gmra.mxu2 %vm1125_vm8, %v1101_v8 }
 0xdac   :  { %v1146_v24 = vpop.f32.mrf.mxu1 }
 0xdb5   :  { %v1169_v7 = vpop.f32.mrf.mxu2 }
 0xdb6   :  { %v1170_v36 = vadd.f32 %v1169_v7, %v1146_v24 }
 0xdb8   :  { %v1176_v45 = vadd.f32 %v1239_v19, %v1170_v36 }
 0xdba   :  { %1178 = vst.msk [vmem:[#allocation10] sm:$0x3] %vm1177_vm9, %v1176_v45 }
 0xdbb   :  { %1189 = dma.vmem_to_hbm [thread:$0]  %s1185_s4, 32, %s1187_s7, [#allocation6]  }
 0xdbc   :  { %1406 = dma.done.wait [#allocation6], 32  }
 0xdbd   :  { %1407 = vsyncadd [#allocation6], 4294967264 }
 0xdbe   :  { %1194 = vsyncpa [#allocation5], 1 }
 0xdbf   :  { %1195 = vsyncpa [#allocation8], 1 }
 0xdc0   :  { %1196 = vsyncpa [#allocation6], 1 }

</bundles_post_ra>
